<compile_context>
chip_gen: v7x
topology: tpu7x:2x2x1
jax: 0.10.0
libtpu: 0.0.40
codegen_flags: <defaults>
</compile_context>

<pallas_src>
import functools

import numpy as np
import jax
import jax.numpy as jnp
from jax.experimental import pallas as pl
from jax.experimental.pallas import tpu as pltpu

BN_EPS = 1e-5


# ----------------------------------------------------------------------------
# Kernel A: 3x3 conv (padding=1, no bias) as a single im2col matmul,
#           plus per-channel sum / sum-of-squares (partial BN statistics).
# ----------------------------------------------------------------------------
def conv_stats_kernel(x_ref, w_ref, y_ref, stats_ref, pad_ref, *, H, W, Cin, Cout):
    # x_ref    : (H, W, Cin)        channels-last input tile for one batch item
    # w_ref    : (9*Cin, Cout)      conv weight, tap-major rows
    # y_ref    : (Cout, H*W)        conv output, channel-planar (lane-dense in H*W)
    # stats_ref: (2, Cout)          [sum, sum_of_squares] over this batch item
    # pad_ref  : (H+2, W+2, Cin)    VMEM scratch holding the zero-padded input
    pad_ref[...] = jnp.zeros_like(pad_ref)
    pad_ref[1:H + 1, 1:W + 1, :] = x_ref[...]

    taps = []
    for ky in range(3):                              # static 3x3 unroll
        for kx in range(3):
            taps.append(pad_ref[ky:ky + H, kx:kx + W, :].reshape(H * W, Cin))
    patches = jnp.concatenate(taps, axis=-1)         # (H*W, 9*Cin)  im2col
    acc = jnp.dot(patches, w_ref[...],
                  preferred_element_type=jnp.float32)  # single MXU matmul -> (H*W, Cout)

    # single-pass partial BatchNorm statistics (reduced over N in the wrapper)
    stats_ref[0:1, :] = jnp.sum(acc, axis=0, keepdims=True)
    stats_ref[1:2, :] = jnp.sum(acc * acc, axis=0, keepdims=True)

    y_ref[...] = acc.T                               # channel-planar store


def conv_and_stats(x_nhwc, w):
    N, H, W, Cin = x_nhwc.shape
    Cout = w.shape[-1]
    w2 = w.reshape(9 * Cin, Cout)                    # tap-major K = 9*Cin
    kern = functools.partial(conv_stats_kernel, H=H, W=W, Cin=Cin, Cout=Cout)
    y, stats = pl.pallas_call(
        kern,
        out_shape=(jax.ShapeDtypeStruct((N, Cout, H * W), jnp.float32),
                   jax.ShapeDtypeStruct((N, 2, Cout), jnp.float32)),
        grid=(N,),
        in_specs=[
            pl.BlockSpec((None, H, W, Cin), lambda n: (n, 0, 0, 0)),
            pl.BlockSpec((9 * Cin, Cout), lambda n: (0, 0)),
        ],
        out_specs=(
            pl.BlockSpec((None, Cout, H * W), lambda n: (n, 0, 0)),
            pl.BlockSpec((None, 2, Cout), lambda n: (n, 0, 0)),
        ),
        scratch_shapes=[pltpu.VMEM((H + 2, W + 2, Cin), jnp.float32)],
        compiler_params=pltpu.CompilerParams(dimension_semantics=("parallel",)),
    )(x_nhwc, w2)
    return y.reshape(N, Cout, H, W), stats           # free row-major reshape


# ----------------------------------------------------------------------------
# Kernel B: fused BN-apply + ReLU (+ separable bilinear x2 upsample).
# ----------------------------------------------------------------------------
def bn_relu_kernel(y_ref, scale_ref, shift_ref, o_ref):
    # y_ref: (C, H, W)   scale/shift: (C, 1, 1)   o_ref: (C, H, W)
    o_ref[...] = jnp.maximum(y_ref[...] * scale_ref[...] + shift_ref[...], 0.0)


def bn_relu_up_kernel(y_ref, scale_ref, shift_ref, ah_ref, awt_ref, o_ref, *, H, W, C):
    # y_ref : (C, H, W)      conv output, channel-planar
    # ah_ref: (2H, H)        H-direction interp matrix (align_corners=True)
    # awt_ref: (W, 2W)       W-direction interp matrix, transposed
    # o_ref : (C, 2H, 2W)
    z = jnp.maximum(y_ref[...] * scale_ref[...] + shift_ref[...], 0.0)

    # W direction for all channels at once: one matmul on a (C*H, W) slab.
    u = jnp.dot(z.reshape(C * H, W), awt_ref[...],
                preferred_element_type=jnp.float32).reshape(C, H, 2 * W)

    # H direction: per-channel 2-D matmuls (C is small here; for large C this
    # loop would be fused into a single matmul instead).
    ah = ah_ref[...]
    for c in range(C):
        o_ref[c] = jnp.dot(ah, u[c], preferred_element_type=jnp.float32)


def _interp_matrix_1d(n_in):
    """(2*n_in, n_in) bilinear x2 matrix, align_corners=True."""
    n_out = 2 * n_in
    A = np.zeros((n_out, n_in), np.float32)
    if n_in == 1:
        A[:, 0] = 1.0
        return A
    for i in range(n_out):
        src = i * (n_in - 1) / (n_out - 1)
        i0 = int(np.floor(src))
        i1 = min(i0 + 1, n_in - 1)
        f = src - i0
        A[i, i0] += 1.0 - f
        A[i, i1] += f
    return A


def bn_relu_upsample(y_nchw, scale, shift, upsample):
    N, C, H, W = y_nchw.shape
    scale3 = scale.reshape(C, 1, 1)
    shift3 = shift.reshape(C, 1, 1)
    cp = pltpu.CompilerParams(dimension_semantics=("parallel",))

    if not upsample:
        return pl.pallas_call(
            bn_relu_kernel,
            out_shape=jax.ShapeDtypeStruct((N, C, H, W), jnp.float32),
            grid=(N,),
            in_specs=[pl.BlockSpec((None, C, H, W), lambda n: (n, 0, 0, 0)),
                      pl.BlockSpec((C, 1, 1), lambda n: (0, 0, 0)),
                      pl.BlockSpec((C, 1, 1), lambda n: (0, 0, 0))],
            out_specs=pl.BlockSpec((None, C, H, W), lambda n: (n, 0, 0, 0)),
            compiler_params=cp,
        )(y_nchw, scale3, shift3)

    ah = jnp.asarray(_interp_matrix_1d(H))        # (2H, H)
    awt = jnp.asarray(_interp_matrix_1d(W).T)     # (W, 2W)
    kern = functools.partial(bn_relu_up_kernel, H=H, W=W, C=C)
    return pl.pallas_call(
        kern,
        out_shape=jax.ShapeDtypeStruct((N, C, 2 * H, 2 * W), jnp.float32),
        grid=(N,),
        in_specs=[pl.BlockSpec((None, C, H, W), lambda n: (n, 0, 0, 0)),
                  pl.BlockSpec((C, 1, 1), lambda n: (0, 0, 0)),
                  pl.BlockSpec((C, 1, 1), lambda n: (0, 0, 0)),
                  pl.BlockSpec((2 * H, H), lambda n: (0, 0)),
                  pl.BlockSpec((W, 2 * W), lambda n: (0, 0))],
        out_specs=pl.BlockSpec((None, C, 2 * H, 2 * W), lambda n: (n, 0, 0, 0)),
        compiler_params=cp,
    )(y_nchw, scale3, shift3, ah, awt)


# ----------------------------------------------------------------------------
# SegmentationBlock: parameter init + forward
# ----------------------------------------------------------------------------
def init_segmentation_block(key, in_channels, out_channels, n_upsamples):
    n_blocks = 1 if n_upsamples <= 1 else n_upsamples
    upsample_flags = [bool(n_upsamples)] + [True] * (n_blocks - 1)
    params = []
    cin = in_channels
    for b in range(n_blocks):
        key, kw, kg, kb = jax.random.split(key, 4)
        w = 0.1 * jax.random.normal(kw, (3, 3, cin, out_channels), jnp.float32)
        gamma = 1.0 + 0.1 * jax.random.normal(kg, (out_channels,), jnp.float32)
        beta = 0.1 * jax.random.normal(kb, (out_channels,), jnp.float32)
        params.append(dict(w=w, gamma=gamma, beta=beta,
                           upsample=upsample_flags[b]))
        cin = out_channels
    return params


def segmentation_block_forward(x_nchw, params):
    x = x_nchw                                           # NCHW between layers
    for p in params:
        x_nhwc = jnp.transpose(x, (0, 2, 3, 1))          # conv consumes channels-last
        y, stats = conv_and_stats(x_nhwc, p["w"])        # y: (N, C, H, W) f32
        N, C, H, W = y.shape

        # finish BatchNorm2d (train-mode) statistics: tiny O(C) parameter math
        count = N * H * W
        tot = jnp.sum(stats, axis=0)                     # (2, C)
        mean = tot[0] / count
        var = jnp.maximum(tot[1] / count - mean * mean, 0.0)   # biased variance
        scale = p["gamma"] * jax.lax.rsqrt(var + BN_EPS)
        shift = p["beta"] - mean * scale

        x = bn_relu_upsample(y, scale, shift, p["upsample"])   # NCHW out
    return x


if __name__ == "__main__":
    key = jax.random.PRNGKey(0)
    key, kx = jax.random.split(key)

    N, Cin, H, W = 2, 4, 16, 16
    Cout, n_upsamples = 8, 2

    x = jax.random.normal(kx, (N, Cin, H, W), jnp.float32)     # NCHW input
    params = init_segmentation_block(key, Cin, Cout, n_upsamples)

    out = segmentation_block_forward(x, params)
    out = jax.block_until_ready(out)

    expected = (N, Cout, H * (2 ** n_upsamples), W * (2 ** n_upsamples))
    assert out.shape == expected, (out.shape, expected)
    assert bool(jnp.all(jnp.isfinite(out)))
    print("KERNEL_OK")
</pallas_src>

<mosaic_0001>
module attributes {stable_mosaic.version = 11 : i64} {
  func.func @conv_stats_kernel(%arg0: i32, %arg1: memref<1x16x16x4xf32, #tpu.memory_space<vmem>>, %arg2: memref<36x8xf32, #tpu.memory_space<vmem>>, %arg3: memref<1x8x256xf32, #tpu.memory_space<vmem>>, %arg4: memref<1x2x8xf32, #tpu.memory_space<vmem>>, %arg5: memref<18x18x4xf32, #tpu.memory_space<vmem>>) attributes {dimension_semantics = [#tpu.dimension_semantics<parallel>], iteration_bounds = array<i64: 2>, scalar_prefetch = 0 : i64, scratch_operands = 1 : i64, tpu.core_type = #tpu.core_type<tc>, window_params = [{transform_indices = @transform_0, window_bounds = array<i64: 1, 16, 16, 4>}, {pipeline_mode = #tpu.pipeline_mode<synchronous>, transform_indices = @transform_1, window_bounds = array<i64: 36, 8>}, {transform_indices = @transform_2, window_bounds = array<i64: 1, 8, 256>}, {transform_indices = @transform_3, window_bounds = array<i64: 1, 2, 8>}]} {
    %cst = arith.constant 0.000000e+00 : f32
    %0 = vector.broadcast %cst : f32 to vector<18x18x4xf32>
    %c0 = arith.constant 0 : index
    %c0_0 = arith.constant 0 : index
    %c0_1 = arith.constant 0 : index
    %1 = vector.load %arg5[%c0, %c0_0, %c0_1] : memref<18x18x4xf32, #tpu.memory_space<vmem>>, vector<18x18x4xf32>
    tpu.vector_store %arg5[%c0, %c0_0, %c0_1], %0 {strides = array<i32>} : memref<18x18x4xf32, #tpu.memory_space<vmem>>, vector<18x18x4xf32>,
    %c0_2 = arith.constant 0 : index
    %c0_3 = arith.constant 0 : index
    %c0_4 = arith.constant 0 : index
    %c0_5 = arith.constant 0 : index
    %2 = vector.load %arg1[%c0_2, %c0_3, %c0_4, %c0_5] : memref<1x16x16x4xf32, #tpu.memory_space<vmem>>, vector<1x16x16x4xf32>
    %3 = vector.shape_cast %2 : vector<1x16x16x4xf32> to vector<16x16x4xf32>
    %c1 = arith.constant 1 : index
    %c1_6 = arith.constant 1 : index
    %c0_7 = arith.constant 0 : index
    %4 = vector.load %arg5[%c1, %c1_6, %c0_7] : memref<18x18x4xf32, #tpu.memory_space<vmem>>, vector<16x16x4xf32>
    tpu.vector_store %arg5[%c1, %c1_6, %c0_7], %3 {strides = array<i32>} : memref<18x18x4xf32, #tpu.memory_space<vmem>>, vector<16x16x4xf32>,
    %c0_8 = arith.constant 0 : index
    %c0_9 = arith.constant 0 : index
    %c0_10 = arith.constant 0 : index
    %5 = vector.load %arg5[%c0_8, %c0_9, %c0_10] : memref<18x18x4xf32, #tpu.memory_space<vmem>>, vector<16x16x4xf32>
    %6 = vector.shape_cast %5 : vector<16x16x4xf32> to vector<256x4xf32>
    %c0_11 = arith.constant 0 : index
    %c1_12 = arith.constant 1 : index
    %c0_13 = arith.constant 0 : index
    %7 = vector.load %arg5[%c0_11, %c1_12, %c0_13] : memref<18x18x4xf32, #tpu.memory_space<vmem>>, vector<16x16x4xf32>
    %8 = vector.shape_cast %7 : vector<16x16x4xf32> to vector<256x4xf32>
    %c0_14 = arith.constant 0 : index
    %c2 = arith.constant 2 : index
    %c0_15 = arith.constant 0 : index
    %9 = vector.load %arg5[%c0_14, %c2, %c0_15] : memref<18x18x4xf32, #tpu.memory_space<vmem>>, vector<16x16x4xf32>
    %10 = vector.shape_cast %9 : vector<16x16x4xf32> to vector<256x4xf32>
    %c1_16 = arith.constant 1 : index
    %c0_17 = arith.constant 0 : index
    %c0_18 = arith.constant 0 : index
    %11 = vector.load %arg5[%c1_16, %c0_17, %c0_18] : memref<18x18x4xf32, #tpu.memory_space<vmem>>, vector<16x16x4xf32>
    %12 = vector.shape_cast %11 : vector<16x16x4xf32> to vector<256x4xf32>
    %c1_19 = arith.constant 1 : index
    %c1_20 = arith.constant 1 : index
    %c0_21 = arith.constant 0 : index
    %13 = vector.load %arg5[%c1_19, %c1_20, %c0_21] : memref<18x18x4xf32, #tpu.memory_space<vmem>>, vector<16x16x4xf32>
    %14 = vector.shape_cast %13 : vector<16x16x4xf32> to vector<256x4xf32>
    %c1_22 = arith.constant 1 : index
    %c2_23 = arith.constant 2 : index
    %c0_24 = arith.constant 0 : index
    %15 = vector.load %arg5[%c1_22, %c2_23, %c0_24] : memref<18x18x4xf32, #tpu.memory_space<vmem>>, vector<16x16x4xf32>
    %16 = vector.shape_cast %15 : vector<16x16x4xf32> to vector<256x4xf32>
    %c2_25 = arith.constant 2 : index
    %c0_26 = arith.constant 0 : index
    %c0_27 = arith.constant 0 : index
    %17 = vector.load %arg5[%c2_25, %c0_26, %c0_27] : memref<18x18x4xf32, #tpu.memory_space<vmem>>, vector<16x16x4xf32>
    %18 = vector.shape_cast %17 : vector<16x16x4xf32> to vector<256x4xf32>
    %c2_28 = arith.constant 2 : index
    %c1_29 = arith.constant 1 : index
    %c0_30 = arith.constant 0 : index
    %19 = vector.load %arg5[%c2_28, %c1_29, %c0_30] : memref<18x18x4xf32, #tpu.memory_space<vmem>>, vector<16x16x4xf32>
    %20 = vector.shape_cast %19 : vector<16x16x4xf32> to vector<256x4xf32>
    %c2_31 = arith.constant 2 : index
    %c2_32 = arith.constant 2 : index
    %c0_33 = arith.constant 0 : index
    %21 = vector.load %arg5[%c2_31, %c2_32, %c0_33] : memref<18x18x4xf32, #tpu.memory_space<vmem>>, vector<16x16x4xf32>
    %22 = vector.shape_cast %21 : vector<16x16x4xf32> to vector<256x4xf32>
    %23 = tpu.concatenate %6, %8, %10, %12, %14, %16, %18, %20, %22 in 1 : vector<256x4xf32>, vector<256x4xf32>, vector<256x4xf32>, vector<256x4xf32>, vector<256x4xf32>, vector<256x4xf32>, vector<256x4xf32>, vector<256x4xf32>, vector<256x4xf32> -> vector<256x36xf32>
    %c0_34 = arith.constant 0 : index
    %c0_35 = arith.constant 0 : index
    %24 = vector.load %arg2[%c0_34, %c0_35] : memref<36x8xf32, #tpu.memory_space<vmem>>, vector<36x8xf32>
    %cst_36 = arith.constant dense<0.000000e+00> : vector<256x8xf32>
    %25 = tpu.matmul %23, %24, %cst_36 {dimension_numbers = #tpu.dot_dimension_numbers<[1], [0], [0], [1], [0, 0, 1, 1], [], []>} : vector<256x36xf32>, vector<36x8xf32>, vector<256x8xf32> -> vector<256x8xf32>
    %cst_37 = arith.constant dense<0.000000e+00> : vector<8xf32>
    %26 = vector.multi_reduction <add>, %25, %cst_37 [0] : vector<256x8xf32> to vector<8xf32>
    %27 = vector.shape_cast %26 : vector<8xf32> to vector<1x8xf32>
    %c0_38 = arith.constant 0 : index
    %c0_39 = arith.constant 0 : index
    %c0_40 = arith.constant 0 : index
    %28 = vector.load %arg4[%c0_38, %c0_39, %c0_40] : memref<1x2x8xf32, #tpu.memory_space<vmem>>, vector<1x1x8xf32>
    %29 = vector.shape_cast %28 : vector<1x1x8xf32> to vector<1x8xf32>
    %30 = vector.shape_cast %27 : vector<1x8xf32> to vector<1x1x8xf32>
    tpu.vector_store %arg4[%c0_38, %c0_39, %c0_40], %30 {strides = array<i32>} : memref<1x2x8xf32, #tpu.memory_space<vmem>>, vector<1x1x8xf32>,
    %31 = arith.mulf %25, %25 : vector<256x8xf32>
    %cst_41 = arith.constant dense<0.000000e+00> : vector<8xf32>
    %32 = vector.multi_reduction <add>, %31, %cst_41 [0] : vector<256x8xf32> to vector<8xf32>
    %33 = vector.shape_cast %32 : vector<8xf32> to vector<1x8xf32>
    %c0_42 = arith.constant 0 : index
    %c1_43 = arith.constant 1 : index
    %c0_44 = arith.constant 0 : index
    %34 = vector.load %arg4[%c0_42, %c1_43, %c0_44] : memref<1x2x8xf32, #tpu.memory_space<vmem>>, vector<1x1x8xf32>
    %35 = vector.shape_cast %34 : vector<1x1x8xf32> to vector<1x8xf32>
    %36 = vector.shape_cast %33 : vector<1x8xf32> to vector<1x1x8xf32>
    tpu.vector_store %arg4[%c0_42, %c1_43, %c0_44], %36 {strides = array<i32>} : memref<1x2x8xf32, #tpu.memory_space<vmem>>, vector<1x1x8xf32>,
    %37 = tpu.transpose %25, [1, 0] : vector<256x8xf32> -> vector<8x256xf32>
    %c0_45 = arith.constant 0 : index
    %c0_46 = arith.constant 0 : index
    %c0_47 = arith.constant 0 : index
    %38 = vector.load %arg3[%c0_45, %c0_46, %c0_47] : memref<1x8x256xf32, #tpu.memory_space<vmem>>, vector<1x8x256xf32>
    %39 = vector.shape_cast %38 : vector<1x8x256xf32> to vector<8x256xf32>
    %40 = vector.shape_cast %37 : vector<8x256xf32> to vector<1x8x256xf32>
    tpu.vector_store %arg3[%c0_45, %c0_46, %c0_47], %40 {strides = array<i32>} : memref<1x8x256xf32, #tpu.memory_space<vmem>>, vector<1x8x256xf32>,
    return
  }
  func.func @transform_0(%arg0: i32) -> (i32, i32, i32, i32) {
    %c0_i32 = arith.constant 0 : i32
    %c0_i32_0 = arith.constant 0 : i32
    %c0_i32_1 = arith.constant 0 : i32
    %c0_i32_2 = arith.constant 0 : i32
    return %arg0, %c0_i32, %c0_i32_0, %c0_i32_1 : i32, i32, i32, i32
  }
  func.func @transform_1(%arg0: i32) -> (i32, i32) {
    %c0_i32 = arith.constant 0 : i32
    %c0_i32_0 = arith.constant 0 : i32
    %c0_i32_1 = arith.constant 0 : i32
    return %c0_i32, %c0_i32_0 : i32, i32
  }
  func.func @transform_2(%arg0: i32) -> (i32, i32, i32) {
    %c0_i32 = arith.constant 0 : i32
    %c0_i32_0 = arith.constant 0 : i32
    %c0_i32_1 = arith.constant 0 : i32
    return %arg0, %c0_i32, %c0_i32_0 : i32, i32, i32
  }
  func.func @transform_3(%arg0: i32) -> (i32, i32, i32) {
    %c0_i32 = arith.constant 0 : i32
    %c0_i32_0 = arith.constant 0 : i32
    %c0_i32_1 = arith.constant 0 : i32
    return %arg0, %c0_i32, %c0_i32_0 : i32, i32, i32
  }
}

</mosaic_0001>

<bundles_post_ra>
// kernel: tpu_custom_call.1
= control target key start
LH: loop header
LB: loop body
LE: loop exit
PB: predicated region body
PF: predicated region fallthrough
CT: control target
= control target key end

     0   :  { %9 = vsyncpa [#allocation4], 0  ;;  %s4482_s0 = inlined_call_operand.vmem [shape: f32[2,16,16,4], index: 0, kind: input, shape index: {}]   ;;  %s4483_s1 = inlined_call_operand.vmem [shape: f32[36,8], index: 1, kind: input, shape index: {}]   ;;  %s4484_s2 = inlined_call_operand.hbm [shape: f32[2,8,256], index: 2, kind: output, shape index: {0}]   ;;  %s4485_s3 = inlined_call_operand.hbm [shape: f32[2,2,8], index: 3, kind: output, shape index: {1}]  }
   0x1   :  { %11 = vsyncpa [#allocation4 + $0x1], 0 }
   0x2   :  { %12 = vsyncpa [#allocation6], 0 }
   0x3   :  { %14 = vsyncpa [#allocation6 + $0x1], 0  ;;  %s2929_s12 = smov 0   ;;  %s2931_s13 = smov 0  }
   0x4   :  { %s2933_s14 = smov 0   ;;  %s2935_s15 = smov 0  }
   0x5 LB: > { %s2950_s16 = sadd.s32 4294967295, %s2896_s15   ;;  %s2571_s17 = sadd.s32 4294967294, %s2896_s15   ;;  %s2896_s15 = sphi %s2935_s15, %s4662_s15   ;;  %s2892_s14 = sphi %s2933_s14, %s4661_s14   ;;  %s2888_s13 = sphi %s2931_s13, %s4660_s13   ;;  %s2884_s12 = sphi %s2929_s12, %s4659_s12  }
   0x6   : > { %s2954_s18 = sadd.s32 1, %s2896_s15   ;;  %s74_s19 = sadd.s32 1, %s2892_s14 }
   0x7   : > { %s71_s20 = ssub.s32 %s2896_s15, %s2954_s18  ;;  %p84_p0 = scmp.ne.s32.totalorder %s2892_s14, %s2888_s13 }
   0x8   : > { %p72_p1 = scmp.eq.s32.totalorder %s71_s20, 0  ;;  %p85_p2 = scmp.eq.s32.totalorder %s2950_s16, 1 }
   0x9   : > { %p90_p3 = scmp.ne.s32.totalorder %s2888_s13, %s2884_s12  ;;  %p91_p4 = scmp.eq.s32.totalorder %s2571_s17, 1 }
   0xa   : > { %s2965_s21 = scalar_select %p72_p1, %s2892_s14, %s74_s19  }
   0xb   : > { %p2967_p5 = por %p85_p2, %p84_p0  ;;  %p2971_p6 = por %p91_p4, %p90_p3 }
   0xc   : > { %p2574_p7 = scmp.ge.s32.totalorder %s2896_s15, 1  ;;  %p146_p8 = scmp.lt.s32.totalorder %s2896_s15, 3 }
   0xe   : > { %p147_p9 = pnand %p2574_p7, %p146_p8 }
  0x10   : > { %150 = sbr.rel (%p147_p9) target bundleno = 983 (0x3d7), region = 28 }
  0x17   : > { %vm180_vm0 = vcmask 31744   ;;  %vm183_vm1 = vcmask 25600   ;;  %p175_p10 = scmp.lt.s32.totalorder %s2950_s16, 1  ;;  %v2898_v0 = vmov 0.0   ;;  %s2899_s29 = smov 4   ;;  %vm1979_vm2 = vcmask 1043456  }
  0x18   : > { %181 = vst.msk [vmem:[#allocation2] sm:$0xff] %vm180_vm0, %v2898_v0  ;;  %182 = vst.msk [vmem:[#allocation2 + $0x8] sm:$0xff] %vm180_vm0, %v2898_v0  ;;  %s2900_s30 = smov 8   ;;  %s2901_s4 = smov 12   ;;  %vm1646_vm3 = vcmask 64512   ;;  %vm1679_vm4 = vcmask 97280  }
  0x19   : > { %185 = vst.msk [vmem:[#allocation2 + $0x18] sm:$0xff] %vm180_vm0, %v2898_v0  ;;  %186 = vst.msk [vmem:[#allocation2 + $0x20] sm:$0xff] %vm180_vm0, %v2898_v0  ;;  %s176_s24 = scalar_select %p175_p10, %s2950_s16, 1  ;;  %vm1712_vm5 = vcmask 130048   ;;  %vm1745_vm6 = vcmask 162816   ;;  %vm1778_vm7 = vcmask 195584  }
  0x1a   : > { %188 = vst.msk [vmem:[#allocation2 + $0x30] sm:$0xff] %vm180_vm0, %v2898_v0  ;;  %189 = vst.msk [vmem:[#allocation2 + $0x38] sm:$0xff] %vm180_vm0, %v2898_v0  ;;  %s2902_s5 = smov 16   ;;  %s2903_s20 = smov 20   ;;  %vm1844_vm8 = vcmask 261120   ;;  %vm1811_vm9 = vcmask 228352  }
  0x1b   : > { %191 = vst.msk [vmem:[#allocation2 + $0x48] sm:$0xff] %vm180_vm0, %v2898_v0  ;;  %192 = vst.msk [vmem:[#allocation2 + $0x50] sm:$0xff] %vm180_vm0, %v2898_v0  ;;  %s2619_s25 = sshll.u32 %s176_s24, 8  ;;  %s2904_s26 = smov 24   ;;  %vm1882_vm10 = vcmask 293888   ;;  %vm2277_vm11 = vcmask 57344  }
  0x1c   : > { %194 = vst.msk [vmem:[#allocation2 + $0x60] sm:$0xff] %vm180_vm0, %v2898_v0  ;;  %195 = vst.msk [vmem:[#allocation2 + $0x68] sm:$0xff] %vm180_vm0, %v2898_v0  ;;  %s3038_s28 = scalar_lea.vmem %s4482_s0, %s2619_s25  ;;  %s2905_s27 = smov 28  }
  0x1d   : > { %197 = vst.msk [vmem:[#allocation2 + $0x78] sm:$0xff] %vm180_vm0, %v2898_v0  ;;  %198 = vst.msk [vmem:[#allocation2 + $0x80] sm:$0xff] %vm180_vm0, %v2898_v0  ;;  %v236_v1 = vld [vmem:[%s3038_s28] sm:$0xff]  ;;  %v238_v2 = vld [vmem:[%s3038_s28 + $0x10] sm:$0xff]  ;;  %s2616_s6 = sshll.u32 %s2950_s16, 5 }
  0x1e   : > { %200 = vst.msk [vmem:[#allocation2 + $0x90] sm:$0xff] %vm180_vm0, %v2898_v0  ;;  %201 = vst.msk [vmem:[#allocation2 + $0x98] sm:$0xff] %vm180_vm0, %v2898_v0  ;;  %v237_v3 = vld [vmem:[%s3038_s28 + $0x8] sm:$0xff]  ;;  %v240_v4 = vld [vmem:[%s3038_s28 + $0x20] sm:$0xff]  ;;  %s4407_s11 = scalar_lea.hbm %s4485_s3, %s2616_s6 }
  0x1f   : > { %203 = vst.msk [vmem:[#allocation2 + $0xa8] sm:$0xff] %vm180_vm0, %v2898_v0  ;;  %204 = vst.msk [vmem:[#allocation2 + $0xb0] sm:$0xff] %vm180_vm0, %v2898_v0  ;;  %v239_v5 = vld [vmem:[%s3038_s28 + $0x18] sm:$0xff]  ;;  %v242_v6 = vld [vmem:[%s3038_s28 + $0x30] sm:$0xff] }
  0x20   : > { %206 = vst.msk [vmem:[#allocation2 + $0xc0] sm:$0xff] %vm180_vm0, %v2898_v0  ;;  %207 = vst.msk [vmem:[#allocation2 + $0xc8] sm:$0xff] %vm180_vm0, %v2898_v0  ;;  %v333_v7 = vld [vmem:[#allocation2 + $0x1] sm:$0xff]  ;;  %v243_v11 = vld [vmem:[%s3038_s28 + $0x38] sm:$0xff] }
  0x21   : > { %209 = vst.msk [vmem:[#allocation2 + $0xd8] sm:$0xff] %vm180_vm0, %v2898_v0  ;;  %210 = vst.msk [vmem:[#allocation2 + $0xe0] sm:$0xff] %vm180_vm0, %v2898_v0  ;;  %v241_v9 = vld [vmem:[%s3038_s28 + $0x28] sm:$0xff]  ;;  %622 = vrot.lane.b32.xlu0 %v333_v7, %s2899_s29  ;;  %v244_v10 = vld [vmem:[%s3038_s28 + $0x40] sm:$0xff] }
  0x22   : > { %212 = vst.msk [vmem:[#allocation2 + $0xf0] sm:$0xff] %vm180_vm0, %v2898_v0  ;;  %213 = vst.msk [vmem:[#allocation2 + $0xf8] sm:$0xff] %vm180_vm0, %v2898_v0  ;;  %v246_v12 = vld [vmem:[%s3038_s28 + $0x50] sm:$0xff]  ;;  %v245_v13 = vld [vmem:[%s3038_s28 + $0x48] sm:$0xff] }
  0x23   : > { %215 = vst.msk [vmem:[#allocation2 + $0x108] sm:$0xff] %vm180_vm0, %v2898_v0  ;;  %216 = vst.msk [vmem:[#allocation2 + $0x110] sm:$0xff] %vm180_vm0, %v2898_v0  ;;  %v248_v14 = vld [vmem:[%s3038_s28 + $0x60] sm:$0xff]  ;;  %v247_v15 = vld [vmem:[%s3038_s28 + $0x58] sm:$0xff] }
  0x24   : > { %218 = vst.msk [vmem:[#allocation2 + $0x120] sm:$0xff] %vm180_vm0, %v2898_v0  ;;  %219 = vst.msk [vmem:[#allocation2 + $0x128] sm:$0xff] %vm180_vm0, %v2898_v0  ;;  %v250_v16 = vld [vmem:[%s3038_s28 + $0x70] sm:$0xff]  ;;  %v249_v17 = vld [vmem:[%s3038_s28 + $0x68] sm:$0xff] }
  0x25   : > { %221 = vst.msk [vmem:[#allocation2 + $0x138] sm:$0xff] %vm180_vm0, %v2898_v0  ;;  %222 = vst.msk [vmem:[#allocation2 + $0x140] sm:$0xff] %vm180_vm0, %v2898_v0  ;;  %v252_v18 = vld [vmem:[%s3038_s28 + $0x80] sm:$0xff]  ;;  %v251_v19 = vld [vmem:[%s3038_s28 + $0x78] sm:$0xff] }
  0x26   : > { %224 = vst.msk [vmem:[#allocation2 + $0x150] sm:$0xff] %vm180_vm0, %v2898_v0  ;;  %225 = vst.msk [vmem:[#allocation2 + $0x158] sm:$0xff] %vm180_vm0, %v2898_v0  ;;  %v254_v20 = vld [vmem:[%s3038_s28 + $0x90] sm:$0xff]  ;;  %v253_v21 = vld [vmem:[%s3038_s28 + $0x88] sm:$0xff] }
  0x27   : > { %227 = vst.msk [vmem:[#allocation2 + $0x168] sm:$0xff] %vm180_vm0, %v2898_v0  ;;  %228 = vst.msk [vmem:[#allocation2 + $0x170] sm:$0xff] %vm180_vm0, %v2898_v0  ;;  %v256_v22 = vld [vmem:[%s3038_s28 + $0xa0] sm:$0xff]  ;;  %v255_v23 = vld [vmem:[%s3038_s28 + $0x98] sm:$0xff] }
  0x28   : > { %230 = vst.msk [vmem:[#allocation2 + $0x180] sm:$0xff] %vm180_vm0, %v2898_v0  ;;  %231 = vst.msk [vmem:[#allocation2 + $0x188] sm:$0xff] %vm180_vm0, %v2898_v0  ;;  %v258_v24 = vld [vmem:[%s3038_s28 + $0xb0] sm:$0xff]  ;;  %v257_v28 = vld [vmem:[%s3038_s28 + $0xa8] sm:$0xff] }
  0x29   : > { %233 = vst.msk [vmem:[#allocation2 + $0x198] sm:$0xff] %vm180_vm0, %v2898_v0  ;;  %234 = vst.msk [vmem:[#allocation2 + $0x1a0] sm:$0xff] %vm180_vm0, %v2898_v0  ;;  %v260_v29 = vld [vmem:[%s3038_s28 + $0xc0] sm:$0xff]  ;;  %v259_v33 = vld [vmem:[%s3038_s28 + $0xb8] sm:$0xff] }
  0x2a   : > { %184 = vst.msk [vmem:[#allocation2 + $0x10] sm:$0x3] %vm183_vm1, %v2898_v0  ;;  %187 = vst.msk [vmem:[#allocation2 + $0x28] sm:$0x3] %vm183_vm1, %v2898_v0  ;;  %v262_v34 = vld [vmem:[%s3038_s28 + $0xd0] sm:$0xff]  ;;  %v261_v35 = vld [vmem:[%s3038_s28 + $0xc8] sm:$0xff] }
  0x2b   : > { %190 = vst.msk [vmem:[#allocation2 + $0x40] sm:$0x3] %vm183_vm1, %v2898_v0  ;;  %193 = vst.msk [vmem:[#allocation2 + $0x58] sm:$0x3] %vm183_vm1, %v2898_v0  ;;  %v264_v36 = vld [vmem:[%s3038_s28 + $0xe0] sm:$0xff]  ;;  %v263_v37 = vld [vmem:[%s3038_s28 + $0xd8] sm:$0xff] }
  0x2c   : > { %196 = vst.msk [vmem:[#allocation2 + $0x70] sm:$0x3] %vm183_vm1, %v2898_v0  ;;  %199 = vst.msk [vmem:[#allocation2 + $0x88] sm:$0x3] %vm183_vm1, %v2898_v0  ;;  %v265_v39 = vld [vmem:[%s3038_s28 + $0xe8] sm:$0xff]  ;;  %v266_v58 = vld [vmem:[%s3038_s28 + $0xf0] sm:$0xff] }
  0x2d   : > { %202 = vst.msk [vmem:[#allocation2 + $0xa0] sm:$0x3] %vm183_vm1, %v2898_v0  ;;  %205 = vst.msk [vmem:[#allocation2 + $0xb8] sm:$0x3] %vm183_vm1, %v2898_v0  ;;  %v267_v62 = vld [vmem:[%s3038_s28 + $0xf8] sm:$0xff]  ;;  %s2906_s28 = smov 32  }
  0x2e   : > { %208 = vst.msk [vmem:[#allocation2 + $0xd0] sm:$0x3] %vm183_vm1, %v2898_v0  ;;  %211 = vst.msk [vmem:[#allocation2 + $0xe8] sm:$0x3] %vm183_vm1, %v2898_v0 }
  0x2f   : > { %214 = vst.msk [vmem:[#allocation2 + $0x100] sm:$0x3] %vm183_vm1, %v2898_v0  ;;  %217 = vst.msk [vmem:[#allocation2 + $0x118] sm:$0x3] %vm183_vm1, %v2898_v0 }
  0x30   : > { %220 = vst.msk [vmem:[#allocation2 + $0x130] sm:$0x3] %vm183_vm1, %v2898_v0  ;;  %223 = vst.msk [vmem:[#allocation2 + $0x148] sm:$0x3] %vm183_vm1, %v2898_v0 }
  0x31   : > { %226 = vst.msk [vmem:[#allocation2 + $0x160] sm:$0x3] %vm183_vm1, %v2898_v0  ;;  %229 = vst.msk [vmem:[#allocation2 + $0x178] sm:$0x3] %vm183_vm1, %v2898_v0  ;;  %v334_v8 = vld [vmem:[#allocation2 + $0x9] sm:$0xff] }
  0x32   : > { %232 = vst.msk [vmem:[#allocation2 + $0x190] sm:$0x3] %vm183_vm1, %v2898_v0  ;;  %235 = vst.msk [vmem:[#allocation2 + $0x1a8] sm:$0x3] %vm183_vm1, %v2898_v0  ;;  %624 = vrot.lane.b32.xlu0 %v334_v8, %s2899_s29  ;;  %v365_v0 = vld [vmem:[#allocation2 + $0x2] sm:$0xff] }
  0x33   : > { %269 = vst.msk [vmem:[#allocation2 + $0x19] sm:$0xff] %vm180_vm0, %v236_v1  ;;  %271 = vst.msk [vmem:[#allocation2 + $0x31] sm:$0xff] %vm180_vm0, %v238_v2 }
  0x34   : > { %270 = vst.msk [vmem:[#allocation2 + $0x21] sm:$0xff] %vm180_vm0, %v237_v3  ;;  %273 = vst.msk [vmem:[#allocation2 + $0x49] sm:$0xff] %vm180_vm0, %v240_v4  ;;  %v366_v3 = vld [vmem:[#allocation2 + $0xa] sm:$0xff] }
  0x35   : > { %272 = vst.msk [vmem:[#allocation2 + $0x39] sm:$0xff] %vm180_vm0, %v239_v5  ;;  %275 = vst.msk [vmem:[#allocation2 + $0x61] sm:$0xff] %vm180_vm0, %v242_v6 }
  0x36   : > { %274 = vst.msk [vmem:[#allocation2 + $0x51] sm:$0xff] %vm180_vm0, %v241_v9  ;;  %277 = vst.msk [vmem:[#allocation2 + $0x79] sm:$0xff] %vm180_vm0, %v244_v10 }
  0x37   : > { %276 = vst.msk [vmem:[#allocation2 + $0x69] sm:$0xff] %vm180_vm0, %v243_v11  ;;  %279 = vst.msk [vmem:[#allocation2 + $0x91] sm:$0xff] %vm180_vm0, %v246_v12 }
  0x38   : > { %278 = vst.msk [vmem:[#allocation2 + $0x81] sm:$0xff] %vm180_vm0, %v245_v13  ;;  %281 = vst.msk [vmem:[#allocation2 + $0xa9] sm:$0xff] %vm180_vm0, %v248_v14 }
  0x39   : > { %280 = vst.msk [vmem:[#allocation2 + $0x99] sm:$0xff] %vm180_vm0, %v247_v15  ;;  %283 = vst.msk [vmem:[#allocation2 + $0xc1] sm:$0xff] %vm180_vm0, %v250_v16 }
  0x3a   : > { %282 = vst.msk [vmem:[#allocation2 + $0xb1] sm:$0xff] %vm180_vm0, %v249_v17  ;;  %285 = vst.msk [vmem:[#allocation2 + $0xd9] sm:$0xff] %vm180_vm0, %v252_v18  ;;  %v3083_v25 = vld [vmem:[#allocation2 + $0x19] sm:$0xff]  ;;  %v3085_v26 = vld [vmem:[#allocation2 + $0x31] sm:$0xff] }
  0x3b   : > { %284 = vst.msk [vmem:[#allocation2 + $0xc9] sm:$0xff] %vm180_vm0, %v251_v19  ;;  %287 = vst.msk [vmem:[#allocation2 + $0xf1] sm:$0xff] %vm180_vm0, %v254_v20  ;;  %626 = vrot.lane.b32.xlu1 %v3083_v25, %s2899_s29  ;;  %v3092_v27 = vld [vmem:[#allocation2 + $0x21] sm:$0xff]  ;;  %630 = vrot.lane.b32.xlu0 %v3085_v26, %s2899_s29  ;;  %v3100_v30 = vld [vmem:[#allocation2 + $0x49] sm:$0xff] }
  0x3c   : > { %286 = vst.msk [vmem:[#allocation2 + $0xe1] sm:$0xff] %vm180_vm0, %v253_v21  ;;  %289 = vst.msk [vmem:[#allocation2 + $0x109] sm:$0xff] %vm180_vm0, %v256_v22  ;;  %v3104_v31 = vld [vmem:[#allocation2 + $0x39] sm:$0xff]  ;;  %v3108_v32 = vld [vmem:[#allocation2 + $0x61] sm:$0xff] }
  0x3d   : > { %288 = vst.msk [vmem:[#allocation2 + $0xf9] sm:$0xff] %vm180_vm0, %v255_v23  ;;  %291 = vst.msk [vmem:[#allocation2 + $0x121] sm:$0xff] %vm180_vm0, %v258_v24  ;;  %v3120_v38 = vld [vmem:[#allocation2 + $0x51] sm:$0xff]  ;;  %v3128_v40 = vld [vmem:[#allocation2 + $0x79] sm:$0xff] }
  0x3e   : > { %290 = vst.msk [vmem:[#allocation2 + $0x111] sm:$0xff] %vm180_vm0, %v257_v28  ;;  %293 = vst.msk [vmem:[#allocation2 + $0x139] sm:$0xff] %vm180_vm0, %v260_v29  ;;  %v3132_v41 = vld [vmem:[#allocation2 + $0x69] sm:$0xff]  ;;  %v3136_v42 = vld [vmem:[#allocation2 + $0x91] sm:$0xff] }
  0x3f   : > { %628 = vrot.lane.b32.xlu1 %v3092_v27, %s2899_s29  ;;  %634 = vrot.lane.b32.xlu0 %v3100_v30, %s2899_s29  ;;  %292 = vst.msk [vmem:[#allocation2 + $0x129] sm:$0xff] %vm180_vm0, %v259_v33  ;;  %295 = vst.msk [vmem:[#allocation2 + $0x151] sm:$0xff] %vm180_vm0, %v262_v34  ;;  %v3140_v43 = vld [vmem:[#allocation2 + $0x81] sm:$0xff]  ;;  %v3144_v44 = vld [vmem:[#allocation2 + $0xa9] sm:$0xff] }
  0x40   : > { %294 = vst.msk [vmem:[#allocation2 + $0x141] sm:$0xff] %vm180_vm0, %v261_v35  ;;  %297 = vst.msk [vmem:[#allocation2 + $0x169] sm:$0xff] %vm180_vm0, %v264_v36  ;;  %v3148_v45 = vld [vmem:[#allocation2 + $0x99] sm:$0xff]  ;;  %v3152_v46 = vld [vmem:[#allocation2 + $0xc1] sm:$0xff] }
  0x41   : > { %296 = vst.msk [vmem:[#allocation2 + $0x159] sm:$0xff] %vm180_vm0, %v263_v37  ;;  %298 = vst.msk [vmem:[#allocation2 + $0x171] sm:$0xff] %vm180_vm0, %v265_v39  ;;  %v3156_v47 = vld [vmem:[#allocation2 + $0xb1] sm:$0xff]  ;;  %v3160_v48 = vld [vmem:[#allocation2 + $0xd9] sm:$0xff] }
  0x42   : > { %v3164_v49 = vld [vmem:[#allocation2 + $0xc9] sm:$0xff]  ;;  %v3168_v50 = vld [vmem:[#allocation2 + $0xf1] sm:$0xff]  ;;  %299 = vst.msk [vmem:[#allocation2 + $0x181] sm:$0xff] %vm180_vm0, %v266_v58  ;;  %300 = vst.msk [vmem:[#allocation2 + $0x189] sm:$0xff] %vm180_vm0, %v267_v62 }
  0x43   : > { %632 = vrot.lane.b32.xlu1 %v3104_v31, %s2899_s29  ;;  %638 = vrot.lane.b32.xlu0 %v3108_v32, %s2899_s29  ;;  %v3172_v51 = vld [vmem:[#allocation2 + $0xe1] sm:$0xff]  ;;  %v3176_v52 = vld [vmem:[#allocation2 + $0x109] sm:$0xff]  ;;  %v3204_v4 = vld [vmem:[#allocation2 + $0x32] sm:$0xff] }
  0x44   : > { %v3180_v53 = vld [vmem:[#allocation2 + $0xf9] sm:$0xff]  ;;  %v357_v54 = vld [vmem:[#allocation2 + $0x121] sm:$0xff]  ;;  %v3211_v6 = vld [vmem:[#allocation2 + $0x4a] sm:$0xff] }
  0x45   : > { %v356_v55 = vld [vmem:[#allocation2 + $0x111] sm:$0xff]  ;;  %v359_v56 = vld [vmem:[#allocation2 + $0x139] sm:$0xff]  ;;  %v3207_v5 = vld [vmem:[#allocation2 + $0x22] sm:$0xff] }
  0x46   : > { %v358_v57 = vld [vmem:[#allocation2 + $0x129] sm:$0xff]  ;;  %v361_v59 = vld [vmem:[#allocation2 + $0x151] sm:$0xff]  ;;  %v3199_v2 = vld [vmem:[#allocation2 + $0x1a] sm:$0xff] }
  0x47   : > { %636 = vrot.lane.b32.xlu1 %v3120_v38, %s2899_s29  ;;  %642 = vrot.lane.b32.xlu0 %v3128_v40, %s2899_s29  ;;  %v360_v60 = vld [vmem:[#allocation2 + $0x141] sm:$0xff]  ;;  %v363_v61 = vld [vmem:[#allocation2 + $0x169] sm:$0xff]  ;;  %v3223_v9 = vld [vmem:[#allocation2 + $0x52] sm:$0xff] }
  0x48   : > { %v362_v63 = vld [vmem:[#allocation2 + $0x159] sm:$0xff]  ;;  %v364_v1 = vld [vmem:[#allocation2 + $0x171] sm:$0xff]  ;;  %v3219_v8 = vld [vmem:[#allocation2 + $0x62] sm:$0xff] }
  0x49   : > { %v3215_v7 = vld [vmem:[#allocation2 + $0x3a] sm:$0xff]  ;;  %v3231_v11 = vld [vmem:[#allocation2 + $0x6a] sm:$0xff]  ;;  %v3235_v12 = vld [vmem:[#allocation2 + $0x92] sm:$0xff] }
  0x4a   : > { %v3227_v10 = vld [vmem:[#allocation2 + $0x7a] sm:$0xff]  ;;  %v3239_v13 = vld [vmem:[#allocation2 + $0x82] sm:$0xff]  ;;  %v379_v14 = vld [vmem:[#allocation2 + $0xaa] sm:$0xff] }
  0x4b   : > { %640 = vrot.lane.b32.xlu1 %v3132_v41, %s2899_s29  ;;  %646 = vrot.lane.b32.xlu0 %v3136_v42, %s2899_s29  ;;  %v378_v15 = vld [vmem:[#allocation2 + $0x9a] sm:$0xff]  ;;  %v381_v16 = vld [vmem:[#allocation2 + $0xc2] sm:$0xff]  ;;  %v380_v17 = vld [vmem:[#allocation2 + $0xb2] sm:$0xff] }
  0x4c   : > { %v3248_v18 = vld [vmem:[#allocation2 + $0xda] sm:$0xff]  ;;  %v382_v19 = vld [vmem:[#allocation2 + $0xca] sm:$0xff]  ;;  %v3253_v20 = vld [vmem:[#allocation2 + $0xf2] sm:$0xff] }
  0x4d   : > { %v3256_v21 = vld [vmem:[#allocation2 + $0xe2] sm:$0xff]  ;;  %v387_v22 = vld [vmem:[#allocation2 + $0x10a] sm:$0xff]  ;;  %v3262_v23 = vld [vmem:[#allocation2 + $0xfa] sm:$0xff] }
  0x4e   : > { %v389_v24 = vld [vmem:[#allocation2 + $0x122] sm:$0xff]  ;;  %v388_v28 = vld [vmem:[#allocation2 + $0x112] sm:$0xff]  ;;  %v391_v29 = vld [vmem:[#allocation2 + $0x13a] sm:$0xff] }
  0x4f   : > { %644 = vrot.lane.b32.xlu1 %v3140_v43, %s2899_s29  ;;  %650 = vrot.lane.b32.xlu0 %v3144_v44, %s2899_s29  ;;  %v390_v34 = vld [vmem:[#allocation2 + $0x12a] sm:$0xff]  ;;  %v393_v35 = vld [vmem:[#allocation2 + $0x152] sm:$0xff]  ;;  %v392_v37 = vld [vmem:[#allocation2 + $0x142] sm:$0xff] }
  0x53   : > { %648 = vrot.lane.b32.xlu1 %v3148_v45, %s2899_s29  ;;  %654 = vrot.lane.b32.xlu0 %v3152_v46, %s2899_s29 }
  0x57   : > { %652 = vrot.lane.b32.xlu1 %v3156_v47, %s2899_s29  ;;  %658 = vrot.lane.b32.xlu0 %v3160_v48, %s2899_s29 }
  0x5b   : > { %656 = vrot.lane.b32.xlu1 %v3164_v49, %s2899_s29  ;;  %662 = vrot.lane.b32.xlu0 %v3168_v50, %s2899_s29 }
  0x5f   : > { %660 = vrot.lane.b32.xlu1 %v3172_v51, %s2899_s29  ;;  %666 = vrot.lane.b32.xlu0 %v3176_v52, %s2899_s29 }
  0x63   : > { %664 = vrot.lane.b32.xlu1 %v3180_v53, %s2899_s29  ;;  %670 = vrot.lane.b32.xlu0 %v357_v54, %s2899_s29  ;;  %v395_v54 = vld [vmem:[#allocation2 + $0x16a] sm:$0xff] }
  0x67   : > { %668 = vrot.lane.b32.xlu1 %v356_v55, %s2899_s29  ;;  %674 = vrot.lane.b32.xlu0 %v359_v56, %s2899_s29  ;;  %v394_v56 = vld [vmem:[#allocation2 + $0x15a] sm:$0xff] }
  0x6b   : > { %672 = vrot.lane.b32.xlu1 %v358_v57, %s2899_s29  ;;  %678 = vrot.lane.b32.xlu0 %v361_v59, %s2899_s29  ;;  %v3287_v59 = vld [vmem:[#allocation2 + $0x18] sm:$0xff] }
  0x6c   : > { %4500 = vst [vmem:[#allocation14_spill] sm:$0xff] %v3287_v59 }
  0x6f   : > { %676 = vrot.lane.b32.xlu1 %v360_v60, %s2899_s29  ;;  %682 = vrot.lane.b32.xlu0 %v363_v61, %s2899_s29  ;;  %v396_v60 = vld [vmem:[#allocation2 + $0x172] sm:$0xff] }
  0x73   : > { %680 = vrot.lane.b32.xlu1 %v362_v63, %s2899_s29  ;;  %750 = vrot.lane.b32.xlu0 %v365_v0, %s2900_s30  ;;  %v3296_v63 = vld [vmem:[#allocation2 + $0x30] sm:$0xff] }
  0x77   : > { %684 = vrot.lane.b32.xlu1 %v364_v1, %s2899_s29  ;;  %754 = vrot.lane.b32.xlu0 %v3199_v2, %s2900_s30  ;;  %v3302_v1 = vld [vmem:[#allocation2 + $0x20] sm:$0xff]  ;;  %s4392_s29 = sand.u32 1, %s2888_s13  }
  0x78   : > { %4504 = vst [vmem:[#allocation18_spill] sm:$0xff] %v3302_v1  ;;  %s2453_s17 = scalar_lea.sflag [#allocation6], %s4392_s29 }
  0x7b   : > { %752 = vrot.lane.b32.xlu1 %v366_v3, %s2900_s30  ;;  %758 = vrot.lane.b32.xlu0 %v3204_v4, %s2900_s30 }
  0x7f   : > { %756 = vrot.lane.b32.xlu1 %v3207_v5, %s2900_s30  ;;  %762 = vrot.lane.b32.xlu0 %v3211_v6, %s2900_s30 }
  0x83   : > { %760 = vrot.lane.b32.xlu1 %v3215_v7, %s2900_s30  ;;  %766 = vrot.lane.b32.xlu0 %v3219_v8, %s2900_s30 }
  0x87   : > { %764 = vrot.lane.b32.xlu1 %v3223_v9, %s2900_s30  ;;  %770 = vrot.lane.b32.xlu0 %v3227_v10, %s2900_s30 }
  0x8b   : > { %768 = vrot.lane.b32.xlu1 %v3231_v11, %s2900_s30  ;;  %774 = vrot.lane.b32.xlu0 %v3235_v12, %s2900_s30 }
  0x8f   : > { %772 = vrot.lane.b32.xlu1 %v3239_v13, %s2900_s30  ;;  %778 = vrot.lane.b32.xlu0 %v379_v14, %s2900_s30  ;;  %v3308_v14 = vld [vmem:[#allocation2 + $0x48] sm:$0xff] }
  0x93   : > { %776 = vrot.lane.b32.xlu1 %v378_v15, %s2900_s30  ;;  %782 = vrot.lane.b32.xlu0 %v381_v16, %s2900_s30  ;;  %v3268_v33 = vpop.permute.xlu0 %622  ;;  %v3314_v16 = vld [vmem:[#allocation2 + $0x38] sm:$0xff] }
  0x97   : > { %780 = vrot.lane.b32.xlu1 %v380_v17, %s2900_s30  ;;  %786 = vrot.lane.b32.xlu0 %v3248_v18, %s2900_s30 }
  0x9b   : > { %784 = vrot.lane.b32.xlu1 %v382_v19, %s2900_s30  ;;  %790 = vrot.lane.b32.xlu0 %v3253_v20, %s2900_s30  ;;  %v3320_v19 = vld [vmem:[#allocation2 + $0x60] sm:$0xff] }
  0x9f   : > { %788 = vrot.lane.b32.xlu1 %v3256_v21, %s2900_s30  ;;  %794 = vrot.lane.b32.xlu0 %v387_v22, %s2900_s30 }
  0xa3   : > { %792 = vrot.lane.b32.xlu1 %v3262_v23, %s2900_s30  ;;  %798 = vrot.lane.b32.xlu0 %v389_v24, %s2900_s30  ;;  %v3326_v24 = vld [vmem:[#allocation2 + $0x50] sm:$0xff] }
  0xa4   : > { %v3272_v36 = vpop.permute.xlu0 %624 }
  0xa5   : > { %4495 = vst [vmem:[#allocation9_spill] sm:$0xff] %v3272_v36 }
  0xa7   : > { %796 = vrot.lane.b32.xlu1 %v388_v28, %s2900_s30  ;;  %802 = vrot.lane.b32.xlu0 %v391_v29, %s2900_s30  ;;  %v3332_v29 = vld [vmem:[#allocation2 + $0x78] sm:$0xff] }
  0xab   : > { %800 = vrot.lane.b32.xlu1 %v390_v34, %s2900_s30  ;;  %806 = vrot.lane.b32.xlu0 %v393_v35, %s2900_s30  ;;  %v3338_v35 = vld [vmem:[#allocation2 + $0x68] sm:$0xff] }
  0xad   : > { %v3276_v39 = vpop.permute.xlu1 %626  ;;  %v3278_v55 = vpop.permute.xlu0 %630 }
  0xae   : > { %4496 = vst [vmem:[#allocation10_spill] sm:$0xff] %v3276_v39  ;;  %4497 = vst [vmem:[#allocation11_spill] sm:$0xff] %v3278_v55  ;;  %v3428_v55 = vld [vmem:[#allocation2 + $0x128] sm:$0xff]  ;;  %v330_v39 = vld [vmem:[#allocation2 + $0x158] sm:$0xff] }
  0xaf   : > { %804 = vrot.lane.b32.xlu1 %v392_v37, %s2900_s30  ;;  %810 = vrot.lane.b32.xlu0 %v395_v54, %s2900_s30  ;;  %v3344_v54 = vld [vmem:[#allocation2 + $0x90] sm:$0xff]  ;;  %4531 = vst [vmem:[#allocation45_spill] sm:$0xff] %v3428_v55 }
  0xb1   : > { %v3282_v57 = vpop.permute.xlu1 %628  ;;  %v3284_v58 = vpop.permute.xlu0 %634 }
  0xb2   : > { %4498 = vst [vmem:[#allocation12_spill] sm:$0xff] %v3282_v57  ;;  %4499 = vst [vmem:[#allocation13_spill] sm:$0xff] %v3284_v58 }
  0xb3   : > { %808 = vrot.lane.b32.xlu1 %v394_v56, %s2900_s30  ;;  %878 = vrot.lane.b32.xlu0 %v3287_v59, %s2901_s4 }
  0xb5   : > { %v3291_v61 = vpop.permute.xlu1 %632  ;;  %v3293_v62 = vpop.permute.xlu0 %638 }
  0xb6   : > { %4501 = vst [vmem:[#allocation15_spill] sm:$0xff] %v3291_v61  ;;  %4502 = vst [vmem:[#allocation16_spill] sm:$0xff] %v3293_v62 }
  0xb7   : > { %812 = vrot.lane.b32.xlu1 %v396_v60, %s2900_s30  ;;  %882 = vrot.lane.b32.xlu0 %v3296_v63, %s2901_s4  ;;  %v3350_v60 = vld [vmem:[#allocation2 + $0x80] sm:$0xff]  ;;  %s2575_s30 = sshll.u32 %s4392_s29, 4 }
  0xb9   : > { %v3300_v0 = vpop.permute.xlu1 %636  ;;  %v3304_v3 = vpop.permute.xlu0 %642 }
  0xba   : > { %4503 = vst [vmem:[#allocation17_spill] sm:$0xff] %v3300_v0  ;;  %4505 = vst [vmem:[#allocation19_spill] sm:$0xff] %v3304_v3 }
  0xbb   : > { %880 = vrot.lane.b32.xlu1 %v3302_v1, %s2901_s4  ;;  %886 = vrot.lane.b32.xlu0 %v3308_v14, %s2901_s4 }
  0xbd   : > { %v3312_v15 = vpop.permute.xlu1 %640  ;;  %v3316_v17 = vpop.permute.xlu0 %646 }
  0xbe   : > { %4506 = vst [vmem:[#allocation20_spill] sm:$0xff] %v3312_v15  ;;  %4507 = vst [vmem:[#allocation21_spill] sm:$0xff] %v3316_v17  ;;  %v3374_v15 = vld [vmem:[#allocation2 + $0xb0] sm:$0xff] }
  0xbf   : > { %884 = vrot.lane.b32.xlu1 %v3314_v16, %s2901_s4  ;;  %890 = vrot.lane.b32.xlu0 %v3320_v19, %s2901_s4 }
  0xc1   : > { %v3324_v22 = vpop.permute.xlu1 %644  ;;  %v3328_v28 = vpop.permute.xlu0 %650 }
  0xc2   : > { %4508 = vst [vmem:[#allocation22_spill] sm:$0xff] %v3324_v22  ;;  %4509 = vst [vmem:[#allocation23_spill] sm:$0xff] %v3328_v28  ;;  %v3362_v22 = vld [vmem:[#allocation2 + $0x98] sm:$0xff] }
  0xc3   : > { %888 = vrot.lane.b32.xlu1 %v3326_v24, %s2901_s4  ;;  %894 = vrot.lane.b32.xlu0 %v3332_v29, %s2901_s4 }
  0xc5   : > { %v3336_v34 = vpop.permute.xlu1 %648  ;;  %v3340_v37 = vpop.permute.xlu0 %654 }
  0xc6   : > { %4510 = vst [vmem:[#allocation24_spill] sm:$0xff] %v3336_v34  ;;  %4511 = vst [vmem:[#allocation25_spill] sm:$0xff] %v3340_v37  ;;  %v3356_v34 = vld [vmem:[#allocation2 + $0xa8] sm:$0xff] }
  0xc7   : > { %892 = vrot.lane.b32.xlu1 %v3338_v35, %s2901_s4  ;;  %898 = vrot.lane.b32.xlu0 %v3344_v54, %s2901_s4  ;;  %v3386_v37 = vld [vmem:[#allocation2 + $0xc8] sm:$0xff] }
  0xc8   : > { %4521 = vst [vmem:[#allocation35_spill] sm:$0xff] %v3386_v37 }
  0xc9   : > { %v3348_v56 = vpop.permute.xlu1 %652  ;;  %v3352_v28 = vpop.permute.xlu0 %658 }
  0xca   : > { %4512 = vst [vmem:[#allocation26_spill] sm:$0xff] %v3348_v56  ;;  %4513 = vst [vmem:[#allocation27_spill] sm:$0xff] %v3352_v28  ;;  %v3368_v56 = vld [vmem:[#allocation2 + $0xc0] sm:$0xff] }
  0xcb   : > { %896 = vrot.lane.b32.xlu1 %v3350_v60, %s2901_s4  ;;  %902 = vrot.lane.b32.xlu0 %v3356_v34, %s2901_s4  ;;  %4516 = vst [vmem:[#allocation30_spill] sm:$0xff] %v3368_v56 }
  0xcd   : > { %v3360_v17 = vpop.permute.xlu1 %656  ;;  %v3364_v3 = vpop.permute.xlu0 %662 }
  0xce   : > { %4514 = vst [vmem:[#allocation28_spill] sm:$0xff] %v3360_v17  ;;  %4515 = vst [vmem:[#allocation29_spill] sm:$0xff] %v3364_v3  ;;  %v3380_v17 = vld [vmem:[#allocation2 + $0xd8] sm:$0xff] }
  0xcf   : > { %900 = vrot.lane.b32.xlu1 %v3362_v22, %s2901_s4  ;;  %906 = vrot.lane.b32.xlu0 %v3368_v56, %s2901_s4  ;;  %4519 = vst [vmem:[#allocation33_spill] sm:$0xff] %v3380_v17  ;;  %v320_v56 = vld [vmem:[#allocation2 + $0xe0] sm:$0xff] }
  0xd1   : > { %v3372_v28 = vpop.permute.xlu1 %660  ;;  %v3376_v62 = vpop.permute.xlu0 %666 }
  0xd2   : > { %4517 = vst [vmem:[#allocation31_spill] sm:$0xff] %v3372_v28  ;;  %4518 = vst [vmem:[#allocation32_spill] sm:$0xff] %v3376_v62  ;;  %v3392_v28 = vld [vmem:[#allocation2 + $0xf0] sm:$0xff] }
  0xd3   : > { %904 = vrot.lane.b32.xlu1 %v3374_v15, %s2901_s4  ;;  %910 = vrot.lane.b32.xlu0 %v3380_v17, %s2901_s4  ;;  %v3407_v17 = vld [vmem:[#allocation2 + $0xf8] sm:$0xff] }
  0xd5   : > { %v3384_v3 = vpop.permute.xlu1 %664  ;;  %v3388_v0 = vpop.permute.xlu0 %670 }
  0xd6   : > { %4520 = vst [vmem:[#allocation34_spill] sm:$0xff] %v3384_v3  ;;  %4522 = vst [vmem:[#allocation36_spill] sm:$0xff] %v3388_v0  ;;  %v3401_v3 = vld [vmem:[#allocation2 + $0x108] sm:$0xff] }
  0xd7   : > { %908 = vrot.lane.b32.xlu1 %v3386_v37, %s2901_s4  ;;  %914 = vrot.lane.b32.xlu0 %v3392_v28, %s2901_s4 }
  0xd9   : > { %v3396_v62 = vpop.permute.xlu1 %668  ;;  %v3398_v58 = vpop.permute.xlu0 %674 }
  0xda   : > { %4523 = vst [vmem:[#allocation37_spill] sm:$0xff] %v3396_v62  ;;  %4524 = vst [vmem:[#allocation38_spill] sm:$0xff] %v3398_v58  ;;  %v3413_v62 = vld [vmem:[#allocation2 + $0x120] sm:$0xff]  ;;  %v3419_v58 = vld [vmem:[#allocation2 + $0x110] sm:$0xff] }
  0xdb   : > { %912 = vrot.lane.b32.xlu1 %v320_v56, %s2901_s4  ;;  %918 = vrot.lane.b32.xlu0 %v3401_v3, %s2901_s4  ;;  %4527 = vst [vmem:[#allocation41_spill] sm:$0xff] %v3413_v62 }
  0xdd   : > { %v3405_v0 = vpop.permute.xlu1 %672  ;;  %v3409_v37 = vpop.permute.xlu0 %678 }
  0xde   : > { %4525 = vst [vmem:[#allocation39_spill] sm:$0xff] %v3405_v0  ;;  %4526 = vst [vmem:[#allocation40_spill] sm:$0xff] %v3409_v37  ;;  %v327_v0 = vld [vmem:[#allocation2 + $0x138] sm:$0xff] }
  0xdf   : > { %916 = vrot.lane.b32.xlu1 %v3407_v17, %s2901_s4  ;;  %922 = vrot.lane.b32.xlu0 %v3413_v62, %s2901_s4  ;;  %v427_v62 = vld [vmem:[#allocation2 + $0x180] sm:$0xff] }
  0xe1   : > { %v3417_v56 = vpop.permute.xlu1 %676  ;;  %v3421_v61 = vpop.permute.xlu0 %682 }
  0xe2   : > { %4528 = vst [vmem:[#allocation42_spill] sm:$0xff] %v3417_v56  ;;  %4529 = vst [vmem:[#allocation43_spill] sm:$0xff] %v3421_v61  ;;  %v329_v56 = vld [vmem:[#allocation2 + $0x150] sm:$0xff]  ;;  %v328_v61 = vld [vmem:[#allocation2 + $0x140] sm:$0xff] }
  0xe3   : > { %920 = vrot.lane.b32.xlu1 %v3419_v58, %s2901_s4  ;;  %926 = vrot.lane.b32.xlu0 %v327_v0, %s2901_s4  ;;  %v331_v0 = vld [vmem:[#allocation2 + $0x168] sm:$0xff] }
  0xe5   : > { %v3426_v37 = vpop.permute.xlu1 %680  ;;  %v3430_v1 = vpop.permute.xlu0 %750 }
  0xe6   : > { %4530 = vst [vmem:[#allocation44_spill] sm:$0xff] %v3426_v37 }
  0xe7   : > { %924 = vrot.lane.b32.xlu1 %v3428_v55, %s2901_s4  ;;  %930 = vrot.lane.b32.xlu0 %v329_v56, %s2901_s4 }
  0xe9   : > { %v3435_v57 = vpop.permute.xlu1 %684  ;;  %v3437_v59 = vpop.permute.xlu0 %754 }
  0xea   : > { %4532 = vst [vmem:[#allocation46_spill] sm:$0xff] %v3435_v57  ;;  %4533 = vst [vmem:[#allocation47_spill] sm:$0xff] %v3437_v59  ;;  %v332_v57 = vld [vmem:[#allocation2 + $0x170] sm:$0xff] }
  0xeb   : > { %928 = vrot.lane.b32.xlu1 %v328_v61, %s2901_s4  ;;  %934 = vrot.lane.b32.xlu0 %v331_v0, %s2901_s4  ;;  %v428_v61 = vld [vmem:[#allocation2 + $0x188] sm:$0xff] }
  0xed   : > { %v3441_v37 = vpop.permute.xlu1 %752  ;;  %v3443_v36 = vpop.permute.xlu0 %758 }
  0xef   : > { %932 = vrot.lane.b32.xlu1 %v330_v39, %s2901_s4  ;;  %938 = vrot.lane.b32.xlu0 %v427_v62, %s2901_s4 }
  0xf1   : > { %v3447_v56 = vpop.permute.xlu1 %756  ;;  %v3449_v55 = vpop.permute.xlu0 %762 }
  0xf3   : > { %936 = vrot.lane.b32.xlu1 %v332_v57, %s2901_s4  ;;  %1006 = vrot.lane.b32.xlu0 %v3083_v25, %s2902_s5 }
  0xf5   : > { %v3454_v0 = vpop.permute.xlu1 %760  ;;  %v3456_v59 = vpop.permute.xlu0 %766 }
  0xf6   : > { %4534 = vst [vmem:[#allocation48_spill] sm:$0xff] %v3456_v59 }
  0xf7   : > { %940 = vrot.lane.b32.xlu1 %v428_v61, %s2901_s4  ;;  %1010 = vrot.lane.b32.xlu0 %v3085_v26, %s2902_s5  ;;  %s4398_s4 = scalar_lea.vmem [#allocation3], %s2575_s30 }
  0xf9   : > { %v3461_v39 = vpop.permute.xlu1 %764  ;;  %v3463_v62 = vpop.permute.xlu0 %770 }
  0xfa   : > { %4535 = vst [vmem:[#allocation49_spill] sm:$0xff] %v3463_v62 }
  0xfb   : > { %1008 = vrot.lane.b32.xlu1 %v3092_v27, %s2902_s5  ;;  %1014 = vrot.lane.b32.xlu0 %v3100_v30, %s2902_s5 }
  0xfd   : > { %v3469_v25 = vpop.permute.xlu1 %768  ;;  %v3471_v57 = vpop.permute.xlu0 %774 }
  0xfe   : > { %4536 = vst [vmem:[#allocation50_spill] sm:$0xff] %v3471_v57 }
  0xff   : > { %1012 = vrot.lane.b32.xlu1 %v3104_v31, %s2902_s5  ;;  %1018 = vrot.lane.b32.xlu0 %v3108_v32, %s2902_s5 }
 0x101   : > { %v3477_v61 = vpop.permute.xlu1 %772  ;;  %v3479_v59 = vpop.permute.xlu0 %778 }
 0x102   : > { %4537 = vst [vmem:[#allocation51_spill] sm:$0xff] %v3477_v61  ;;  %4538 = vst [vmem:[#allocation52_spill] sm:$0xff] %v3479_v59 }
 0x103   : > { %1016 = vrot.lane.b32.xlu1 %v3120_v38, %s2902_s5  ;;  %1022 = vrot.lane.b32.xlu0 %v3128_v40, %s2902_s5 }
 0x105   : > { %v3485_v27 = vpop.permute.xlu1 %776  ;;  %v3487_v62 = vpop.permute.xlu0 %782 }
 0x106   : > { %4539 = vst [vmem:[#allocation53_spill] sm:$0xff] %v3485_v27 }
 0x107   : > { %1020 = vrot.lane.b32.xlu1 %v3132_v41, %s2902_s5  ;;  %1026 = vrot.lane.b32.xlu0 %v3136_v42, %s2902_s5 }
 0x109   : > { %v3493_v32 = vpop.permute.xlu1 %780  ;;  %v3495_v57 = vpop.permute.xlu0 %786 }
 0x10a   : > { %4540 = vst [vmem:[#allocation54_spill] sm:$0xff] %v3493_v32 }
 0x10b   : > { %1024 = vrot.lane.b32.xlu1 %v3140_v43, %s2902_s5  ;;  %1030 = vrot.lane.b32.xlu0 %v3144_v44, %s2902_s5 }
 0x10d   : > { %v3501_v40 = vpop.permute.xlu1 %784  ;;  %v3503_v59 = vpop.permute.xlu0 %790 }
 0x10e   : > { %4541 = vst [vmem:[#allocation55_spill] sm:$0xff] %v3503_v59 }
 0x10f   : > { %1028 = vrot.lane.b32.xlu1 %v3148_v45, %s2902_s5  ;;  %1034 = vrot.lane.b32.xlu0 %v3152_v46, %s2902_s5  ;;  %v1877_v46 = vld [vmem:[%s4483_s1] sm:$0xff] }
 0x111   : > { %v3509_v42 = vpop.permute.xlu1 %788  ;;  %v3511_v32 = vpop.permute.xlu0 %794 }
 0x112   : > { %4542 = vst [vmem:[#allocation56_spill] sm:$0xff] %v3511_v32  ;;  %v532_v32 = vld [vmem:[#allocation2 + $0x79] sm:$0xff] }
 0x113   : > { %1032 = vrot.lane.b32.xlu1 %v3156_v47, %s2902_s5  ;;  %1038 = vrot.lane.b32.xlu0 %v3160_v48, %s2902_s5  ;;  %v1878_v47 = vld [vmem:[%s4483_s1 + $0x8] sm:$0xff] }
 0x115   : > { %v3517_v43 = vpop.permute.xlu1 %792  ;;  %v3519_v44 = vpop.permute.xlu0 %798 }
 0x116   : > { %4543 = vst [vmem:[#allocation57_spill] sm:$0xff] %v3517_v43  ;;  %4544 = vst [vmem:[#allocation58_spill] sm:$0xff] %v3519_v44  ;;  %v2716_v44 = vpack.c.bf16 %v1878_v47, %v1877_v46  ;;  %v301_v43 = vld [vmem:[#allocation2] sm:$0xff] }
 0x117   : > { %1036 = vrot.lane.b32.xlu1 %v3164_v49, %s2902_s5  ;;  %1042 = vrot.lane.b32.xlu0 %v3168_v50, %s2902_s5  ;;  %v1879_v50 = vld [vmem:[%s4483_s1 + $0x10] sm:$0xff] }
 0x118   : > { %2717 = vmatprep.subr.bf16.mxu0 %v2716_v44  ;;  %2724 = vmatprep.subr.bf16.mxu1 %v2716_v44 }
 0x119   : > { %v3525_v45 = vpop.permute.xlu1 %796  ;;  %v3533_v48 = vpop.permute.xlu0 %802  ;;  %2719 = vmatpush3.bf16.msra.mxu0 %v2716_v44  ;;  %2727 = vmatpush3.bf16.msra.mxu1 %v2716_v44 }
 0x11a   : > { %4545 = vst [vmem:[#allocation59_spill] sm:$0xff] %v3525_v45  ;;  %4546 = vst [vmem:[#allocation60_spill] sm:$0xff] %v3533_v48  ;;  %v1880_v45 = vld [vmem:[%s4483_s1 + $0x18] sm:$0xff] }
 0x11b   : > { %1040 = vrot.lane.b32.xlu1 %v3172_v51, %s2902_s5  ;;  %1046 = vrot.lane.b32.xlu0 %v3176_v52, %s2902_s5  ;;  %v2720_v51 = vpack.c.bf16 %v1880_v45, %v1879_v50 }
 0x11d   : > { %v3539_v49 = vpop.permute.xlu1 %800  ;;  %v3547_v48 = vpop.permute.xlu0 %806  ;;  %2721 = vmatprep.subr.bf16.mxu0 %v2720_v51  ;;  %2725 = vmatprep.subr.bf16.mxu1 %v2720_v51 }
 0x11e   : > { %4547 = vst [vmem:[#allocation61_spill] sm:$0xff] %v3539_v49  ;;  %4548 = vst [vmem:[#allocation62_spill] sm:$0xff] %v3547_v48  ;;  %2723 = vmatpush3.bf16.msra.mxu0 %v2720_v51  ;;  %2728 = vmatpush3.bf16.msra.mxu1 %v2720_v51 }
 0x11f   : > { %1044 = vrot.lane.b32.xlu1 %v3180_v53, %s2902_s5  ;;  %1136 = vrot.lane.b32.xlu0 %v3207_v5, %s2903_s20  ;;  %v1881_v53 = vld [vmem:[%s4483_s1 + $0x20] sm:$0xf] }
 0x120   : > { %2666 = vmatprep.subr.msk.mxu0 %vm1979_vm2, %v1881_v53  ;;  %2726 = vmatprep.subr.msk.mxu1 %vm1979_vm2, %v1881_v53 }
 0x121   : > { %v3553_v52 = vpop.permute.xlu1 %804  ;;  %v3555_v46 = vpop.permute.xlu0 %810 }
 0x122   : > { %4549 = vst [vmem:[#allocation63_spill] sm:$0xff] %v3553_v52  ;;  %4550 = vst [vmem:[#allocation64_spill] sm:$0xff] %v3555_v46  ;;  %2667 = vmatpush3.msk.msra.mxu0 %vm1979_vm2, %v1881_v53  ;;  %2729 = vmatpush3.msk.msra.mxu1 %vm1979_vm2, %v1881_v53 }
 0x123   : > { %1134 = vrot.lane.b32.xlu1 %v3199_v2, %s2903_s20  ;;  %1264 = vrot.lane.b32.xlu0 %v3314_v16, %s2904_s26 }
 0x125   : > { %v3564_v5 = vpop.permute.xlu1 %808  ;;  %v3566_v44 = vpop.permute.xlu0 %878 }
 0x126   : > { %4551 = vst [vmem:[#allocation65_spill] sm:$0xff] %v3564_v5 }
 0x127   : > { %1262 = vrot.lane.b32.xlu1 %v3296_v63, %s2904_s26  ;;  %1392 = vrot.lane.b32.xlu0 %v3104_v31, %s2905_s27 }
 0x129   : > { %v3572_v2 = vpop.permute.xlu1 %812  ;;  %v3574_v45 = vpop.permute.xlu0 %882 }
 0x12a   : > { %4552 = vst [vmem:[#allocation66_spill] sm:$0xff] %v3572_v2 }
 0x12b   : > { %1390 = vrot.lane.b32.xlu1 %v3085_v26, %s2905_s27  ;;  %1138 = vrot.lane.b32.xlu0 %v3204_v4, %s2903_s20 }
 0x12d   : > { %v3580_v47 = vpop.permute.xlu1 %880  ;;  %v3582_v50 = vpop.permute.xlu0 %886 }
 0x12f   : > { %1518 = vrot.lane.b32.xlu1 %v3204_v4, %s2906_s28  ;;  %1140 = vrot.lane.b32.xlu0 %v3215_v7, %s2903_s20 }
 0x131   : > { %v3588_v31 = vpop.permute.xlu1 %884  ;;  %v3590_v51 = vpop.permute.xlu0 %890 }
 0x133   : > { %1520 = vrot.lane.b32.xlu1 %v3215_v7, %s2906_s28  ;;  %1268 = vrot.lane.b32.xlu0 %v3326_v24, %s2904_s26 }
 0x135   : > { %v3596_v26 = vpop.permute.xlu1 %888  ;;  %v3598_v53 = vpop.permute.xlu0 %894 }
 0x137   : > { %1266 = vrot.lane.b32.xlu1 %v3308_v14, %s2904_s26  ;;  %1396 = vrot.lane.b32.xlu0 %v3120_v38, %s2905_s27 }
 0x139   : > { %v3604_v4 = vpop.permute.xlu1 %892  ;;  %v3606_v2 = vpop.permute.xlu0 %898 }
 0x13b   : > { %1394 = vrot.lane.b32.xlu1 %v3100_v30, %s2905_s27  ;;  %1142 = vrot.lane.b32.xlu0 %v3211_v6, %s2903_s20 }
 0x13d   : > { %v3612_v7 = vpop.permute.xlu1 %896  ;;  %v3614_v46 = vpop.permute.xlu0 %902 }
 0x13e   : > { %4553 = vst [vmem:[#allocation67_spill] sm:$0xff] %v3614_v46 }
 0x13f   : > { %1522 = vrot.lane.b32.xlu1 %v3211_v6, %s2906_s28  ;;  %1144 = vrot.lane.b32.xlu0 %v3223_v9, %s2903_s20  ;;  %v530_v6 = vld [vmem:[#allocation2 + $0x61] sm:$0xff] }
 0x141   : > { %v3620_v38 = vpop.permute.xlu1 %900  ;;  %v3622_v5 = vpop.permute.xlu0 %906 }
 0x142   : > { %4554 = vst [vmem:[#allocation68_spill] sm:$0xff] %v3620_v38  ;;  %4555 = vst [vmem:[#allocation69_spill] sm:$0xff] %v3622_v5 }
 0x143   : > { %1524 = vrot.lane.b32.xlu1 %v3223_v9, %s2906_s28  ;;  %1272 = vrot.lane.b32.xlu0 %v3338_v35, %s2904_s26 }
 0x145   : > { %v3628_v30 = vpop.permute.xlu1 %904  ;;  %v3630_v48 = vpop.permute.xlu0 %910 }
 0x146   : > { %4556 = vst [vmem:[#allocation70_spill] sm:$0xff] %v3628_v30 }
 0x147   : > { %1270 = vrot.lane.b32.xlu1 %v3320_v19, %s2904_s26  ;;  %1400 = vrot.lane.b32.xlu0 %v3132_v41, %s2905_s27 }
 0x149   : > { %v3636_v52 = vpop.permute.xlu1 %908  ;;  %v3638_v49 = vpop.permute.xlu0 %914 }
 0x14a   : > { %4557 = vst [vmem:[#allocation71_spill] sm:$0xff] %v3636_v52 }
 0x14b   : > { %1398 = vrot.lane.b32.xlu1 %v530_v6, %s2905_s27  ;;  %1146 = vrot.lane.b32.xlu0 %v3219_v8, %s2903_s20 }
 0x14d   : > { %v3643_v9 = vpop.permute.xlu1 %912  ;;  %v3645_v5 = vpop.permute.xlu0 %918 }
 0x14e   : > { %4558 = vst [vmem:[#allocation72_spill] sm:$0xff] %v3645_v5  ;;  %v1614_v5 = vsel %vm180_vm0, %v301_v43, %v3268_v33  ;;  %v537_v33 = vld [vmem:[#allocation2 + $0xb1] sm:$0xff] }
 0x14f   : > { %1526 = vrot.lane.b32.xlu1 %v3219_v8, %s2906_s28  ;;  %1148 = vrot.lane.b32.xlu0 %v3231_v11, %s2903_s20  ;;  %v4577_v43 = vld [vmem:[#allocation9_spill] sm:$0xff] }
 0x151   : > { %v3651_v41 = vpop.permute.xlu1 %916  ;;  %v3653_v52 = vpop.permute.xlu0 %922 }
 0x152   : > { %4559 = vst [vmem:[#allocation73_spill] sm:$0xff] %v3653_v52  ;;  %v567_v52 = vld [vmem:[#allocation2 + $0x9a] sm:$0xff] }
 0x153   : > { %1528 = vrot.lane.b32.xlu1 %v3231_v11, %s2906_s28  ;;  %1166 = vrot.lane.b32.xlu0 %v3248_v18, %s2903_s20 }
 0x155   : > { %v3659_v6 = vpop.permute.xlu1 %920  ;;  %v3661_v30 = vpop.permute.xlu0 %926 }
 0x156   : > { %4560 = vst [vmem:[#allocation74_spill] sm:$0xff] %v3659_v6  ;;  %4561 = vst [vmem:[#allocation75_spill] sm:$0xff] %v3661_v30  ;;  %v536_v6 = vld [vmem:[#allocation2 + $0xa9] sm:$0xff] }
 0x157   : > { %1274 = vrot.lane.b32.xlu1 %v3332_v29, %s2904_s26  ;;  %1402 = vrot.lane.b32.xlu0 %v532_v32, %s2905_s27  ;;  %v533_v29 = vld [vmem:[#allocation2 + $0x81] sm:$0xff] }
 0x159   : > { %v3666_v8 = vpop.permute.xlu1 %924  ;;  %v3668_v27 = vpop.permute.xlu0 %930 }
 0x15a   : > { %4562 = vst [vmem:[#allocation76_spill] sm:$0xff] %v3666_v8  ;;  %4563 = vst [vmem:[#allocation77_spill] sm:$0xff] %v3668_v27 }
 0x15b   : > { %1276 = vrot.lane.b32.xlu1 %v3350_v60, %s2904_s26  ;;  %1294 = vrot.lane.b32.xlu0 %v3392_v28, %s2904_s26 }
 0x15d   : > { %v3674_v11 = vpop.permute.xlu1 %928  ;;  %v3676_v18 = vpop.permute.xlu0 %934 }
 0x15e   : > { %4564 = vst [vmem:[#allocation78_spill] sm:$0xff] %v3674_v11  ;;  %4565 = vst [vmem:[#allocation79_spill] sm:$0xff] %v3676_v18 }
 0x15f   : > { %1168 = vrot.lane.b32.xlu1 %v3256_v21, %s2903_s20  ;;  %1530 = vrot.lane.b32.xlu0 %v3227_v10, %s2906_s28  ;;  %v542_v21 = vld [vmem:[#allocation2 + $0xf1] sm:$0xff] }
 0x161   : > { %v3682_v32 = vpop.permute.xlu1 %932  ;;  %v3684_v27 = vpop.permute.xlu0 %938 }
 0x162   : > { %4566 = vst [vmem:[#allocation80_spill] sm:$0xff] %v3682_v32  ;;  %4567 = vst [vmem:[#allocation81_spill] sm:$0xff] %v3684_v27 }
 0x163   : > { %1404 = vrot.lane.b32.xlu1 %v533_v29, %s2905_s27  ;;  %1296 = vrot.lane.b32.xlu0 %v3407_v17, %s2904_s26 }
 0x165   : > { %v3689_v28 = vpop.permute.xlu1 %936  ;;  %v3691_v60 = vpop.permute.xlu0 %1006 }
 0x166   : > { %4568 = vst [vmem:[#allocation82_spill] sm:$0xff] %v3689_v28 }
 0x167   : > { %1150 = vrot.lane.b32.xlu1 %v3227_v10, %s2903_s20  ;;  %1532 = vrot.lane.b32.xlu0 %v3239_v13, %s2906_s28  ;;  %v543_v10 = vld [vmem:[#allocation2 + $0xf9] sm:$0xff] }
 0x169   : > { %v3697_v18 = vpop.permute.xlu1 %940  ;;  %v3699_v32 = vpop.permute.xlu0 %1010 }
 0x16a   : > { %4569 = vst [vmem:[#allocation83_spill] sm:$0xff] %v3697_v18 }
 0x16b   : > { %1422 = vrot.lane.b32.xlu1 %v542_v21, %s2905_s27  ;;  %1278 = vrot.lane.b32.xlu0 %v3344_v54, %s2904_s26 }
 0x16d   : > { %v3704_v17 = vpop.permute.xlu1 %1008  ;;  %v3706_v29 = vpop.permute.xlu0 %1014 }
 0x16f   : > { %1152 = vrot.lane.b32.xlu1 %v3239_v13, %s2903_s20  ;;  %1550 = vrot.lane.b32.xlu0 %v3253_v20, %s2906_s28  ;;  %v534_v13 = vld [vmem:[#allocation2 + $0x91] sm:$0xff] }
 0x171   : > { %v3712_v27 = vpop.permute.xlu1 %1012  ;;  %v3714_v18 = vpop.permute.xlu0 %1018 }
 0x173   : > { %1424 = vrot.lane.b32.xlu1 %v543_v10, %s2905_s27  ;;  %1280 = vrot.lane.b32.xlu0 %v3362_v22, %s2904_s26 }
 0x175   : > { %v3719_v54 = vpop.permute.xlu1 %1016  ;;  %v3721_v21 = vpop.permute.xlu0 %1022 }
 0x177   : > { %1170 = vrot.lane.b32.xlu1 %v3253_v20, %s2903_s20  ;;  %1552 = vrot.lane.b32.xlu0 %v3262_v23, %s2906_s28  ;;  %v535_v20 = vld [vmem:[#allocation2 + $0x99] sm:$0xff] }
 0x179   : > { %v3727_v28 = vpop.permute.xlu1 %1020  ;;  %v3729_v11 = vpop.permute.xlu0 %1026 }
 0x17a   : > { %4570 = vst [vmem:[#allocation84_spill] sm:$0xff] %v3729_v11 }
 0x17b   : > { %1406 = vrot.lane.b32.xlu1 %v534_v13, %s2905_s27  ;;  %1298 = vrot.lane.b32.xlu0 %v3401_v3, %s2904_s26  ;;  %v471_v13 = vld [vmem:[#allocation2 + $0x92] sm:$0xff] }
 0x17d   : > { %v3734_v22 = vpop.permute.xlu1 %1024  ;;  %v3736_v10 = vpop.permute.xlu0 %1030 }
 0x17e   : > { %4571 = vst [vmem:[#allocation85_spill] sm:$0xff] %v3736_v10 }
 0x17f   : > { %1172 = vrot.lane.b32.xlu1 %v3262_v23, %s2903_s20  ;;  %1534 = vrot.lane.b32.xlu0 %v3235_v12, %s2906_s28  ;;  %v544_v23 = vld [vmem:[#allocation2 + $0x109] sm:$0xff] }
 0x181   : > { %v3742_v30 = vpop.permute.xlu1 %1028  ;;  %v3744_v8 = vpop.permute.xlu0 %1034 }
 0x182   : > { %4572 = vst [vmem:[#allocation86_spill] sm:$0xff] %v3742_v30  ;;  %4573 = vst [vmem:[#allocation87_spill] sm:$0xff] %v3744_v8  ;;  %v1647_v30 = vsel %vm1646_vm3, %v1614_v5, %v3430_v1 }
 0x183   : > { %1408 = vrot.lane.b32.xlu1 %v535_v20, %s2905_s27  ;;  %1300 = vrot.lane.b32.xlu0 %v3419_v58, %s2904_s26  ;;  %v576_v20 = vld [vmem:[#allocation2 + $0x10a] sm:$0xff] }
 0x185   : > { %v3749_v3 = vpop.permute.xlu1 %1032  ;;  %v3751_v10 = vpop.permute.xlu0 %1038 }
 0x186   : > { %4574 = vst [vmem:[#allocation88_spill] sm:$0xff] %v3749_v3 }
 0x187   : > { %1154 = vrot.lane.b32.xlu1 %v471_v13, %s2903_s20  ;;  %1536 = vrot.lane.b32.xlu0 %v567_v52, %s2906_s28  ;;  %v545_v13 = vld [vmem:[#allocation2 + $0x111] sm:$0xff] }
 0x189   : > { %v3755_v12 = vpop.permute.xlu1 %1036  ;;  %v3757_v46 = vpop.permute.xlu0 %1042 }
 0x18a   : > { %4575 = vst [vmem:[#allocation89_spill] sm:$0xff] %v3755_v12 }
 0x18b   : > { %1426 = vrot.lane.b32.xlu1 %v544_v23, %s2905_s27  ;;  %1282 = vrot.lane.b32.xlu0 %v3356_v34, %s2904_s26 }
 0x18d   : > { %v3762_v58 = vpop.permute.xlu1 %1040  ;;  %v3764_v8 = vpop.permute.xlu0 %1046 }
 0x18e   : > { %4576 = vst [vmem:[#allocation90_spill] sm:$0xff] %v3764_v8  ;;  %v482_v8 = vld [vmem:[#allocation2 + $0x112] sm:$0xff] }
 0x18f   : > { %1156 = vrot.lane.b32.xlu1 %v567_v52, %s2903_s20  ;;  %1554 = vrot.lane.b32.xlu0 %v576_v20, %s2906_s28 }
 0x191   : > { %v3768_v3 = vpop.permute.xlu1 %1044  ;;  %v1137_v12 = vpop.permute.xlu0 %1136 }
 0x193   : > { %1428 = vrot.lane.b32.xlu1 %v545_v13, %s2905_s27  ;;  %1174 = vrot.lane.b32.xlu0 %v576_v20, %s2903_s20  ;;  %v302_v20 = vld [vmem:[#allocation2 + $0x8] sm:$0xff] }
 0x194   : > { %v1615_v61 = vsel %vm180_vm0, %v302_v20, %v4577_v43  ;;  %v4579_v43 = vld [vmem:[#allocation10_spill] sm:$0xff] }
 0x195   : > { %v1135_v23 = vpop.permute.xlu1 %1134  ;;  %v1265_v34 = vpop.permute.xlu0 %1264  ;;  %v1648_v1 = vsel %vm1646_vm3, %v1615_v61, %v3441_v37 }
 0x197   : > { %1048 = vrot.lane.b32.xlu1 %v545_v13, %s2902_s5  ;;  %1410 = vrot.lane.b32.xlu0 %v536_v6, %s2905_s27  ;;  %v1680_v13 = vsel %vm1679_vm4, %v1647_v30, %v3566_v44  ;;  %v1681_v44 = vsel %vm1679_vm4, %v1648_v1, %v3580_v47 }
 0x198   : > { %v1713_v38 = vsel %vm1712_vm5, %v1680_v13, %v3691_v60  ;;  %v1714_v60 = vsel %vm1712_vm5, %v1681_v44, %v3704_v17 }
 0x199   : > { %v1263_v52 = vpop.permute.xlu1 %1262  ;;  %v1393_v59 = vpop.permute.xlu0 %1392  ;;  %v1747_v37 = vsel %vm1745_vm6, %v1714_v60, %v1137_v12 }
 0x19a   : > { %v1780_v47 = vsel %vm1778_vm7, %v1747_v37, %v1265_v34  ;;  %v4583_v37 = vld [vmem:[#allocation12_spill] sm:$0xff] }
 0x19b   : > { %1284 = vrot.lane.b32.xlu1 %v3374_v15, %s2904_s26  ;;  %1176 = vrot.lane.b32.xlu0 %v482_v8, %s2903_s20  ;;  %v1746_v15 = vsel %vm1745_vm6, %v1713_v38, %v1135_v23  ;;  %v473_v23 = vld [vmem:[#allocation2 + $0xaa] sm:$0xff]  ;;  %v1813_v20 = vsel %vm1811_vm9, %v1780_v47, %v1393_v59  ;;  %v4581_v59 = vld [vmem:[#allocation45_spill] sm:$0xff] }
 0x19c   : > { %v1779_v5 = vsel %vm1778_vm7, %v1746_v15, %v1263_v52  ;;  %v4578_v52 = vld [vmem:[#allocation41_spill] sm:$0xff]  ;;  %v4580_v15 = vld [vmem:[#allocation14_spill] sm:$0xff] }
 0x19d   : > { %v1391_v6 = vpop.permute.xlu1 %1390  ;;  %v1139_v11 = vpop.permute.xlu0 %1138  ;;  %v1616_v34 = vsel %vm180_vm0, %v4580_v15, %v4579_v43 }
 0x19e   : > { %v1812_v30 = vsel %vm1811_vm9, %v1779_v5, %v1391_v6  ;;  %v546_v6 = vld [vmem:[#allocation2 + $0x121] sm:$0xff] }
 0x19f   : > { %1556 = vrot.lane.b32.xlu1 %v482_v8, %s2906_s28  ;;  %1412 = vrot.lane.b32.xlu0 %v537_v33, %s2905_s27  ;;  %v4582_v5 = vld [vmem:[#allocation47_spill] sm:$0xff] }
 0x1a0   : > { %v1649_v44 = vsel %vm1646_vm3, %v1616_v34, %v4582_v5  ;;  %v578_v34 = vld [vmem:[#allocation2 + $0x122] sm:$0xff] }
 0x1a1   : > { %v1519_v38 = vpop.permute.xlu1 %1518  ;;  %v1141_v61 = vpop.permute.xlu0 %1140 }
 0x1a2   : > { %v1845_v8 = vsel %vm1844_vm8, %v1812_v30, %v1519_v38  ;;  %v569_v30 = vld [vmem:[#allocation2 + $0xb2] sm:$0xff]  ;;  %v1682_v38 = vsel %vm1679_vm4, %v1649_v44, %v3574_v45 }
 0x1a3   : > { %1302 = vrot.lane.b32.xlu1 %v4578_v52, %s2904_s26  ;;  %2668 = vmatprep.mubr.msk.f32.mxu0 %vm1882_vm10, %v1845_v8  ;;  %v1715_v8 = vsel %vm1712_vm5, %v1682_v38, %v3699_v32  ;;  %v4584_v52 = vld [vmem:[#allocation18_spill] sm:$0xff] }
 0x1a4   : > { %1158 = vrot.lane.b32.xlu0 %v473_v23, %s2903_s20  ;;  %v1617_v47 = vsel %vm180_vm0, %v4584_v52, %v4583_v37 }
 0x1a5   : > { %v1521_v13 = vpop.permute.xlu1 %1520  ;;  %v1269_v33 = vpop.permute.xlu0 %1268 }
 0x1a6   : > { %v1846_v17 = vsel %vm1844_vm8, %v1813_v20, %v1521_v13  ;;  %v1748_v20 = vsel %vm1745_vm6, %v1715_v8, %v1139_v11 }
 0x1a7   : > { %1538 = vrot.lane.b32.xlu1 %v473_v23, %s2906_s28  ;;  %2669 = vmatmul.mubr.msk.f32.vlgmr.msra.gmra.mrb[0].mxu0 %vm1882_vm10, %v1846_v17  ;;  %v506_v23 = vld [vmem:[#allocation2 + $0xc0] sm:$0xff]  ;;  %v1650_v17 = vsel %vm1646_vm3, %v1617_v47, %v3447_v56 }
 0x1a8   : > { %1430 = vrot.lane.b32.xlu0 %v546_v6, %s2905_s27 }
 0x1a9   : > { %v1267_v12 = vpop.permute.xlu1 %1266  ;;  %v1397_v1 = vpop.permute.xlu0 %1396 }
 0x1aa   : > { %v1781_v45 = vsel %vm1778_vm7, %v1748_v20, %v1267_v12  ;;  %v484_v20 = vld [vmem:[#allocation2 + $0x12a] sm:$0xff] }
 0x1ab   : > { %1304 = vrot.lane.b32.xlu1 %v4581_v59, %s2904_s26 }
 0x1ac   : > { %1050 = vrot.lane.b32.xlu0 %v546_v6, %s2902_s5  ;;  %v1683_v6 = vsel %vm1679_vm4, %v1650_v17, %v3588_v31  ;;  %v547_v31 = vld [vmem:[#allocation2 + $0x129] sm:$0xff] }
 0x1ad   : > { %v1395_v60 = vpop.permute.xlu1 %1394  ;;  %v1143_v13 = vpop.permute.xlu0 %1142  ;;  %v1716_v15 = vsel %vm1712_vm5, %v1683_v6, %v3712_v27  ;;  %v4586_v17 = vld [vmem:[#allocation15_spill] sm:$0xff] }
 0x1ae   : > { %v1814_v32 = vsel %vm1811_vm9, %v1781_v45, %v1395_v60  ;;  %v1749_v59 = vsel %vm1745_vm6, %v1716_v15, %v1141_v61  ;;  %v4585_v60 = vld [vmem:[#allocation11_spill] sm:$0xff] }
 0x1af   : > { %1540 = vrot.lane.b32.xlu1 %v569_v30, %s2906_s28  ;;  %v1782_v56 = vsel %vm1778_vm7, %v1749_v59, %v1269_v33  ;;  %v1618_v33 = vsel %vm180_vm0, %v3296_v63, %v4585_v60  ;;  %v1619_v63 = vsel %vm180_vm0, %v3314_v16, %v4586_v17  ;;  %v539_v15 = vld [vmem:[#allocation2 + $0xc9] sm:$0xff]  ;;  %v517_v60 = vld [vmem:[#allocation2 + $0x140] sm:$0xff] }
 0x1b0   : > { %1286 = vrot.lane.b32.xlu0 %v506_v23, %s2904_s26  ;;  %v1815_v12 = vsel %vm1811_vm9, %v1782_v56, %v1397_v1  ;;  %v1651_v1 = vsel %vm1646_vm3, %v1618_v33, %v3443_v36  ;;  %v507_v23 = vld [vmem:[#allocation2 + $0xc8] sm:$0xff]  ;;  %v1652_v36 = vsel %vm1646_vm3, %v1619_v63, %v3454_v0 }
 0x1b1   : > { %v1523_v43 = vpop.permute.xlu1 %1522  ;;  %v1145_v5 = vpop.permute.xlu0 %1144  ;;  %v1684_v37 = vsel %vm1679_vm4, %v1651_v1, %v3582_v50 }
 0x1b2   : > { %v1847_v11 = vsel %vm1844_vm8, %v1814_v32, %v1523_v43  ;;  %v1717_v47 = vsel %vm1712_vm5, %v1684_v37, %v3706_v29  ;;  %v1685_v32 = vsel %vm1679_vm4, %v1652_v36, %v3596_v26  ;;  %v516_v26 = vld [vmem:[#allocation2 + $0x138] sm:$0xff] }
 0x1b3   : > { %1160 = vrot.lane.b32.xlu1 %v569_v30, %s2903_s20  ;;  %2671 = vmatprep.mubr.msk.f32.mxu0 %vm1882_vm10, %v1847_v11  ;;  %v538_v30 = vld [vmem:[#allocation2 + $0xc1] sm:$0xff]  ;;  %v1750_v45 = vsel %vm1745_vm6, %v1717_v47, %v1143_v13  ;;  %v1718_v16 = vsel %vm1712_vm5, %v1685_v32, %v3719_v54  ;;  %v508_v47 = vld [vmem:[#allocation2 + $0xd8] sm:$0xff] }
 0x1b4   : > { %1558 = vrot.lane.b32.xlu0 %v578_v34, %s2906_s28  ;;  %v1751_v11 = vsel %vm1745_vm6, %v1718_v16, %v1145_v5  ;;  %v580_v36 = vld [vmem:[#allocation2 + $0x13a] sm:$0xff] }
 0x1b5   : > { %v1525_v44 = vpop.permute.xlu1 %1524  ;;  %v1273_v38 = vpop.permute.xlu0 %1272 }
 0x1b6   : > { %v1848_v27 = vsel %vm1844_vm8, %v1815_v12, %v1525_v44  ;;  %v1784_v0 = vsel %vm1778_vm7, %v1751_v11, %v1273_v38  ;;  %v548_v44 = vld [vmem:[#allocation2 + $0x139] sm:$0xff] }
 0x1b7   : > { %1432 = vrot.lane.b32.xlu1 %v547_v31, %s2905_s27  ;;  %2672 = vmatmul.mubr.msk.f32.gmra.mrb[2].mxu0 %vm1882_vm10, %v1848_v27  ;;  %v4587_v27 = vld [vmem:[#allocation13_spill] sm:$0xff] }
 0x1b8   : > { %1178 = vrot.lane.b32.xlu0 %v578_v34, %s2903_s20  ;;  %v1620_v38 = vsel %vm180_vm0, %v3308_v14, %v4587_v27  ;;  %v4589_v11 = vld [vmem:[#allocation25_spill] sm:$0xff] }
 0x1b9   : > { %v1271_v61 = vpop.permute.xlu1 %1270  ;;  %v1401_v8 = vpop.permute.xlu0 %1400 }
 0x1ba   : > { %v1783_v50 = vsel %vm1778_vm7, %v1750_v45, %v1271_v61  ;;  %v1817_v59 = vsel %vm1811_vm9, %v1784_v0, %v1401_v8  ;;  %v4590_v0 = vld [vmem:[#allocation30_spill] sm:$0xff] }
 0x1bb   : > { %1052 = vrot.lane.b32.xlu1 %v547_v31, %s2902_s5  ;;  %v475_v31 = vld [vmem:[#allocation2 + $0xc2] sm:$0xff] }
 0x1bc   : > { %1414 = vrot.lane.b32.xlu0 %v538_v30, %s2905_s27  ;;  %v1653_v30 = vsel %vm1646_vm3, %v1620_v38, %v3449_v55 }
 0x1bd   : > { %v1399_v52 = vpop.permute.xlu1 %1398  ;;  %v1147_v6 = vpop.permute.xlu0 %1146  ;;  %v1686_v33 = vsel %vm1679_vm4, %v1653_v30, %v3590_v51 }
 0x1be   : > { %v1816_v29 = vsel %vm1811_vm9, %v1783_v50, %v1399_v52  ;;  %v1719_v1 = vsel %vm1712_vm5, %v1686_v33, %v3714_v18  ;;  %v571_v52 = vld [vmem:[#allocation2 + $0xca] sm:$0xff]  ;;  %v4588_v18 = vld [vmem:[#allocation17_spill] sm:$0xff] }
 0x1bf   : > { %1288 = vrot.lane.b32.xlu1 %v507_v23, %s2904_s26  ;;  %v1752_v23 = vsel %vm1745_vm6, %v1719_v1, %v1147_v6  ;;  %v1621_v63 = vsel %vm180_vm0, %v3326_v24, %v4588_v18  ;;  %v4592_v33 = vld [vmem:[#allocation35_spill] sm:$0xff] }
 0x1c0   : > { %1180 = vrot.lane.b32.xlu0 %v484_v20, %s2903_s20  ;;  %v1654_v6 = vsel %vm1646_vm3, %v1621_v63, %v3461_v39  ;;  %v541_v1 = vld [vmem:[#allocation2 + $0xe1] sm:$0xff] }
 0x1c1   : > { %v1527_v43 = vpop.permute.xlu1 %1526  ;;  %v1149_v34 = vpop.permute.xlu0 %1148  ;;  %v1687_v50 = vsel %vm1679_vm4, %v1654_v6, %v3604_v4  ;;  %v572_v63 = vld [vmem:[#allocation2 + $0xda] sm:$0xff]  ;;  %v4594_v6 = vld [vmem:[#allocation48_spill] sm:$0xff] }
 0x1c2   : > { %v1849_v13 = vsel %vm1844_vm8, %v1816_v29, %v1527_v43  ;;  %v1720_v29 = vsel %vm1712_vm5, %v1687_v50, %v3727_v28  ;;  %v549_v43 = vld [vmem:[#allocation2 + $0x141] sm:$0xff] }
 0x1c3   : > { %1560 = vrot.lane.b32.xlu1 %v484_v20, %s2906_s28  ;;  %2674 = vmatprep.mubr.msk.f32.mxu0 %vm1882_vm10, %v1849_v13  ;;  %v1753_v24 = vsel %vm1745_vm6, %v1720_v29, %v1149_v34  ;;  %v573_v50 = vld [vmem:[#allocation2 + $0xe2] sm:$0xff] }
 0x1c4   : > { %1416 = vrot.lane.b32.xlu0 %v539_v15, %s2905_s27 }
 0x1c5   : > { %v1529_v56 = vpop.permute.xlu1 %1528  ;;  %v1167_v12 = vpop.permute.xlu0 %1166 }
 0x1c6   : > { %v1850_v54 = vsel %vm1844_vm8, %v1817_v59, %v1529_v56  ;;  %v540_v59 = vld [vmem:[#allocation2 + $0xd9] sm:$0xff] }
 0x1c7   : > { %1306 = vrot.lane.b32.xlu1 %v516_v26, %s2904_s26  ;;  %2675 = vmatmul.mubr.msk.f32.gmra.mrb[4].mxu0 %vm1882_vm10, %v1850_v54  ;;  %v1630_v26 = vsel %vm180_vm0, %v4590_v0, %v4589_v11  ;;  %v4595_v0 = vld [vmem:[#allocation20_spill] sm:$0xff] }
 0x1c8   : > { %1162 = vrot.lane.b32.xlu0 %v475_v31, %s2903_s20  ;;  %v1663_v34 = vsel %vm1646_vm3, %v1630_v26, %v3487_v62 }
 0x1c9   : > { %v1275_v5 = vpop.permute.xlu1 %1274  ;;  %v1403_v61 = vpop.permute.xlu0 %1402  ;;  %v1696_v56 = vsel %vm1679_vm4, %v1663_v34, %v3630_v48 }
 0x1ca   : > { %v1785_v14 = vsel %vm1778_vm7, %v1752_v23, %v1275_v5  ;;  %v509_v5 = vld [vmem:[#allocation2 + $0xe0] sm:$0xff] }
 0x1cb   : > { %1542 = vrot.lane.b32.xlu1 %v475_v31, %s2906_s28  ;;  %v1818_v51 = vsel %vm1811_vm9, %v1785_v14, %v1403_v61  ;;  %v1729_v31 = vsel %vm1712_vm5, %v1696_v56, %v3751_v10  ;;  %v486_v61 = vld [vmem:[#allocation2 + $0x142] sm:$0xff]  ;;  %v582_v56 = vld [vmem:[#allocation2 + $0x152] sm:$0xff] }
 0x1cc   : > { %1434 = vrot.lane.b32.xlu0 %v548_v44, %s2905_s27 }
 0x1cd   : > { %v1277_v8 = vpop.permute.xlu1 %1276  ;;  %v1295_v37 = vpop.permute.xlu0 %1294 }
 0x1ce   : > { %v1786_v13 = vsel %vm1778_vm7, %v1753_v24, %v1277_v8  ;;  %v550_v24 = vld [vmem:[#allocation2 + $0x151] sm:$0xff] }
 0x1cf   : > { %1308 = vrot.lane.b32.xlu1 %v517_v60, %s2904_s26  ;;  %v4591_v60 = vld [vmem:[#allocation28_spill] sm:$0xff] }
 0x1d0   : > { %1054 = vrot.lane.b32.xlu0 %v548_v44, %s2902_s5  ;;  %v1762_v44 = vsel %vm1745_vm6, %v1729_v31, %v1167_v12  ;;  %v1631_v10 = vsel %vm180_vm0, %v4592_v33, %v4591_v60 }
 0x1d1   : > { %v1169_v55 = vpop.permute.xlu1 %1168  ;;  %v1531_v20 = vpop.permute.xlu0 %1530  ;;  %v1795_v38 = vsel %vm1778_vm7, %v1762_v44, %v1295_v37  ;;  %v1664_v8 = vsel %vm1646_vm3, %v1631_v10, %v3501_v40 }
 0x1d2   : > { %v1851_v17 = vsel %vm1844_vm8, %v1818_v51, %v1531_v20  ;;  %v1697_v23 = vsel %vm1679_vm4, %v1664_v8, %v3643_v9 }
 0x1d3   : > { %1544 = vrot.lane.b32.xlu1 %v571_v52, %s2906_s28  ;;  %2677 = vmatprep.mubr.msk.f32.mxu0 %vm1882_vm10, %v1851_v17  ;;  %v1730_v14 = vsel %vm1712_vm5, %v1697_v23, %v3762_v58  ;;  %v519_v17 = vld [vmem:[#allocation2 + $0x158] sm:$0xff] }
 0x1d4   : > { %1290 = vrot.lane.b32.xlu0 %v508_v47, %s2904_s26  ;;  %v1763_v47 = vsel %vm1745_vm6, %v1730_v14, %v1169_v55  ;;  %v553_v14 = vld [vmem:[#allocation2 + $0x171] sm:$0xff] }
 0x1d5   : > { %v1405_v45 = vpop.permute.xlu1 %1404  ;;  %v1297_v32 = vpop.permute.xlu0 %1296 }
 0x1d6   : > { %v1819_v39 = vsel %vm1811_vm9, %v1786_v13, %v1405_v45  ;;  %v1796_v20 = vsel %vm1778_vm7, %v1763_v47, %v1297_v32  ;;  %v4593_v45 = vld [vmem:[#allocation16_spill] sm:$0xff] }
 0x1d7   : > { %1164 = vrot.lane.b32.xlu1 %v571_v52, %s2903_s20  ;;  %v518_v52 = vld [vmem:[#allocation2 + $0x150] sm:$0xff]  ;;  %v1622_v58 = vsel %vm180_vm0, %v3320_v19, %v4593_v45 }
 0x1d8   : > { %1562 = vrot.lane.b32.xlu0 %v580_v36, %s2906_s28 }
 0x1d9   : > { %v1151_v16 = vpop.permute.xlu1 %1150  ;;  %v1533_v15 = vpop.permute.xlu0 %1532 }
 0x1da   : > { %v1852_v4 = vsel %vm1844_vm8, %v1819_v39, %v1533_v15  ;;  %v551_v15 = vld [vmem:[#allocation2 + $0x159] sm:$0xff] }
 0x1db   : > { %1436 = vrot.lane.b32.xlu1 %v549_v43, %s2905_s27  ;;  %2678 = vmatmul.mubr.msk.f32.gmra.mrb[6].mxu0 %vm1882_vm10, %v1852_v4 }
 0x1dc   : > { %1182 = vrot.lane.b32.xlu0 %v580_v36, %s2903_s20  ;;  %v1655_v36 = vsel %vm1646_vm3, %v1622_v58, %v4594_v6 }
 0x1dd   : > { %v1423_v28 = vpop.permute.xlu1 %1422  ;;  %v1279_v54 = vpop.permute.xlu0 %1278  ;;  %v1688_v32 = vsel %vm1679_vm4, %v1655_v36, %v3598_v53 }
 0x1de   : > { %v1828_v62 = vsel %vm1811_vm9, %v1795_v38, %v1423_v28  ;;  %v4596_v38 = vld [vmem:[#allocation27_spill] sm:$0xff] }
 0x1df   : > { %1056 = vrot.lane.b32.xlu1 %v549_v43, %s2902_s5  ;;  %v1721_v43 = vsel %vm1712_vm5, %v1688_v32, %v3721_v21  ;;  %v1623_v21 = vsel %vm180_vm0, %v3338_v35, %v4595_v0  ;;  %v554_v0 = vld [vmem:[#allocation2 + $0x181] sm:$0xff] }
 0x1e0   : > { %1418 = vrot.lane.b32.xlu0 %v540_v59, %s2905_s27  ;;  %v1754_v19 = vsel %vm1745_vm6, %v1721_v43, %v1151_v16  ;;  %v1656_v26 = vsel %vm1646_vm3, %v1623_v21, %v3469_v25  ;;  %v2784_v43 = vld [vmem:[#allocation2 + $0x78] sm:$0xff] }
 0x1e1   : > { %v1153_v27 = vpop.permute.xlu1 %1152  ;;  %v1551_v30 = vpop.permute.xlu0 %1550  ;;  %v1787_v39 = vsel %vm1778_vm7, %v1754_v19, %v1279_v54  ;;  %v1689_v28 = vsel %vm1679_vm4, %v1656_v26, %v3612_v7 }
 0x1e2   : > { %v1861_v48 = vsel %vm1844_vm8, %v1828_v62, %v1551_v30  ;;  %v1722_v59 = vsel %vm1712_vm5, %v1689_v28, %v3734_v22  ;;  %v520_v30 = vld [vmem:[#allocation2 + $0x168] sm:$0xff] }
 0x1e3   : > { %1292 = vrot.lane.b32.xlu1 %v509_v5, %s2904_s26  ;;  %2692 = vmatprep.mubr.msk.f32.mxu1 %vm1882_vm10, %v1861_v48  ;;  %v1755_v35 = vsel %vm1745_vm6, %v1722_v59, %v1153_v27  ;;  %v583_v5 = vld [vmem:[#allocation2 + $0x15a] sm:$0xff]  ;;  %v523_v28 = vld [vmem:[#allocation2 + $0x188] sm:$0xff] }
 0x1e4   : > { %1184 = vrot.lane.b32.xlu0 %v486_v61, %s2903_s20 }
 0x1e5   : > { %v1425_v12 = vpop.permute.xlu1 %1424  ;;  %v1281_v37 = vpop.permute.xlu0 %1280 }
 0x1e6   : > { %v1829_v40 = vsel %vm1811_vm9, %v1796_v20, %v1425_v12  ;;  %v1788_v31 = vsel %vm1778_vm7, %v1755_v35, %v1281_v37  ;;  %v521_v37 = vld [vmem:[#allocation2 + $0x170] sm:$0xff]  ;;  %v4598_v20 = vld [vmem:[#allocation31_spill] sm:$0xff] }
 0x1e7   : > { %1564 = vrot.lane.b32.xlu1 %v486_v61, %s2906_s28  ;;  %v4597_v61 = vld [vmem:[#allocation33_spill] sm:$0xff]  ;;  %v2785_v35 = vld [vmem:[#allocation2 + $0x80] sm:$0xff] }
 0x1e8   : > { %1420 = vrot.lane.b32.xlu0 %v541_v1, %s2905_s27  ;;  %v1632_v22 = vsel %vm180_vm0, %v4597_v61, %v4596_v38  ;;  %v552_v1 = vld [vmem:[#allocation2 + $0x169] sm:$0xff] }
 0x1e9   : > { %v1171_v51 = vpop.permute.xlu1 %1170  ;;  %v1553_v18 = vpop.permute.xlu0 %1552  ;;  %v1665_v62 = vsel %vm1646_vm3, %v1632_v22, %v3495_v57  ;;  %v4605_v22 = vld [vmem:[#allocation86_spill] sm:$0xff] }
 0x1ea   : > { %v1862_v9 = vsel %vm1844_vm8, %v1829_v40, %v1553_v18  ;;  %v1698_v48 = vsel %vm1679_vm4, %v1665_v62, %v3638_v49 }
 0x1eb   : > { %1310 = vrot.lane.b32.xlu1 %v518_v52, %s2904_s26  ;;  %2693 = vmatmul.mubr.msk.f32.vlgmr.msra.gmra.mrb[0].mxu1 %vm1882_vm10, %v1862_v9  ;;  %v1731_v33 = vsel %vm1712_vm5, %v1698_v48, %v3757_v46  ;;  %v584_v9 = vld [vmem:[#allocation2 + $0x16a] sm:$0xff] }
 0x1ec   : > { %1312 = vrot.lane.b32.xlu0 %v519_v17, %s2904_s26  ;;  %v1764_v10 = vsel %vm1745_vm6, %v1731_v33, %v1171_v51  ;;  %v2783_v51 = vld [vmem:[#allocation2 + $0xe0] sm:$0xff]  ;;  %v2786_v33 = vld [vmem:[#allocation2 + $0xf0] sm:$0xff] }
 0x1ed   : > { %v1407_v55 = vpop.permute.xlu1 %1406  ;;  %v1299_v29 = vpop.permute.xlu0 %1298  ;;  %v1633_v17 = vsel %vm180_vm0, %v2783_v51, %v4598_v20  ;;  %v4609_v20 = vld [vmem:[#allocation90_spill] sm:$0xff] }
 0x1ee   : > { %v1820_v4 = vsel %vm1811_vm9, %v1787_v39, %v1407_v55  ;;  %v1797_v8 = vsel %vm1778_vm7, %v1764_v10, %v1299_v29  ;;  %v1666_v18 = vsel %vm1646_vm3, %v1633_v17, %v3509_v42  ;;  %v585_v55 = vld [vmem:[#allocation2 + $0x172] sm:$0xff]  ;;  %v522_v29 = vld [vmem:[#allocation2 + $0x180] sm:$0xff] }
 0x1ef   : > { %1546 = vrot.lane.b32.xlu1 %v572_v63, %s2906_s28  ;;  %v1699_v63 = vsel %vm1679_vm4, %v1666_v18, %v3651_v41  ;;  %v4606_v10 = vld [vmem:[#allocation29_spill] sm:$0xff] }
 0x1f0   : > { %1548 = vrot.lane.b32.xlu0 %v573_v50, %s2906_s28  ;;  %v1732_v58 = vsel %vm1712_vm5, %v1699_v63, %v3768_v3  ;;  %v4599_v3 = vld [vmem:[#allocation19_spill] sm:$0xff]  ;;  %v524_v63 = vld [vmem:[#allocation2 + $0x198] sm:$0xff] }
 0x1f1   : > { %v3969_v13 = vpop.permute.xlu1 %1172  ;;  %v1535_v11 = vpop.permute.xlu0 %1534 }
 0x1f2   : > { %v1853_v53 = vsel %vm1844_vm8, %v1820_v4, %v1535_v11  ;;  %v1765_v6 = vsel %vm1745_vm6, %v1732_v58, %v3969_v13  ;;  %v4600_v13 = vld [vmem:[#allocation49_spill] sm:$0xff]  ;;  %v4601_v11 = vld [vmem:[#allocation84_spill] sm:$0xff] }
 0x1f3   : > { %1438 = vrot.lane.b32.xlu1 %v550_v24, %s2905_s27  ;;  %2680 = vmatprep.mubr.msk.f32.mxu0 %vm1882_vm10, %v1853_v53 }
 0x1f4   : > { %1440 = vrot.lane.b32.xlu0 %v551_v15, %s2905_s27 }
 0x1f5   : > { %v1409_v16 = vpop.permute.xlu1 %1408  ;;  %v1301_v34 = vpop.permute.xlu0 %1300 }
 0x1f6   : > { %v1821_v25 = vsel %vm1811_vm9, %v1788_v31, %v1409_v16  ;;  %v1798_v42 = vsel %vm1778_vm7, %v1765_v6, %v1301_v34  ;;  %v4602_v31 = vld [vmem:[#allocation22_spill] sm:$0xff] }
 0x1f7   : > { %1058 = vrot.lane.b32.xlu1 %v550_v24, %s2902_s5  ;;  %v1624_v24 = vsel %vm180_vm0, %v2784_v43, %v4599_v3  ;;  %v4610_v43 = vld [vmem:[#allocation34_spill] sm:$0xff] }
 0x1f8   : > { %1060 = vrot.lane.b32.xlu0 %v551_v15, %s2902_s5  ;;  %v1657_v39 = vsel %vm1646_vm3, %v1624_v24, %v4600_v13 }
 0x1f9   : > { %v3989_v54 = vpop.permute.xlu1 %1154  ;;  %v1537_v44 = vpop.permute.xlu0 %1536  ;;  %v1690_v15 = vsel %vm1679_vm4, %v1657_v39, %v3606_v2  ;;  %v557_v39 = vld [vmem:[#allocation2 + $0x1a1] sm:$0xff] }
 0x1fa   : > { %v1854_v7 = vsel %vm1844_vm8, %v1821_v25, %v1537_v44  ;;  %v1723_v53 = vsel %vm1712_vm5, %v1690_v15, %v4601_v11  ;;  %v4603_v25 = vld [vmem:[#allocation51_spill] sm:$0xff]  ;;  %v4612_v15 = vld [vmem:[#allocation74_spill] sm:$0xff] }
 0x1fb   : > { %1566 = vrot.lane.b32.xlu1 %v582_v56, %s2906_s28  ;;  %2681 = vmatmul.mubr.msk.f32.gmra.mrb[8].mxu0 %vm1882_vm10, %v1854_v7  ;;  %v1756_v21 = vsel %vm1745_vm6, %v1723_v53, %v3989_v54  ;;  %v4604_v7 = vld [vmem:[#allocation68_spill] sm:$0xff] }
 0x1fc   : > { %1568 = vrot.lane.b32.xlu0 %v583_v5, %s2906_s28 }
 0x1fd   : > { %v1427_v27 = vpop.permute.xlu1 %1426  ;;  %v1283_v60 = vpop.permute.xlu0 %1282 }
 0x1fe   : > { %v1830_v57 = vsel %vm1811_vm9, %v1797_v8, %v1427_v27  ;;  %v1789_v26 = vsel %vm1778_vm7, %v1756_v21, %v1283_v60  ;;  %v586_v60 = vld [vmem:[#allocation2 + $0x182] sm:$0xff]  ;;  %v1634_v8 = vsel %vm180_vm0, %v2786_v33, %v4606_v10  ;;  %v2789_v33 = vld [vmem:[#allocation2 + $0x98] sm:$0xff]  ;;  %v4617_v10 = vld [vmem:[#allocation24_spill] sm:$0xff] }
 0x1ff   : > { %1186 = vrot.lane.b32.xlu1 %v582_v56, %s2903_s20  ;;  %v555_v56 = vld [vmem:[#allocation2 + $0x189] sm:$0xff] }
 0x200   : > { %1314 = vrot.lane.b32.xlu0 %v520_v30, %s2904_s26 }
 0x201   : > { %v4009_v12 = vpop.permute.xlu1 %1156  ;;  %v1555_v23 = vpop.permute.xlu0 %1554 }
 0x202   : > { %v1863_v49 = vsel %vm1844_vm8, %v1830_v57, %v1555_v23  ;;  %v4607_v23 = vld [vmem:[#allocation55_spill] sm:$0xff] }
 0x203   : > { %1188 = vrot.lane.b32.xlu1 %v583_v5, %s2903_s20  ;;  %2695 = vmatprep.mubr.msk.f32.mxu1 %vm1882_vm10, %v1863_v49  ;;  %v1625_v5 = vsel %vm180_vm0, %v2785_v35, %v4602_v31  ;;  %v1667_v49 = vsel %vm1646_vm3, %v1634_v8, %v4607_v23  ;;  %v4613_v35 = vld [vmem:[#allocation21_spill] sm:$0xff]  ;;  %v1627_v8 = vsel %vm180_vm0, %v2789_v33, %v4617_v10  ;;  %v4631_v33 = vld [vmem:[#allocation54_spill] sm:$0xff] }
 0x204   : > { %1442 = vrot.lane.b32.xlu0 %v552_v1, %s2905_s27  ;;  %v1658_v44 = vsel %vm1646_vm3, %v1625_v5, %v4603_v25 }
 0x205   : > { %v1429_v46 = vpop.permute.xlu1 %1428  ;;  %v4017_v52 = vpop.permute.xlu0 %1174  ;;  %v1691_v38 = vsel %vm1679_vm4, %v1658_v44, %v4604_v7  ;;  %v4616_v7 = vld [vmem:[#allocation85_spill] sm:$0xff] }
 0x206   : > { %v1831_v50 = vsel %vm1811_vm9, %v1798_v42, %v1429_v46  ;;  %v1724_v27 = vsel %vm1712_vm5, %v1691_v38, %v4605_v22  ;;  %v4608_v46 = vld [vmem:[#allocation72_spill] sm:$0xff]  ;;  %v556_v42 = vld [vmem:[#allocation2 + $0x199] sm:$0xff] }
 0x207   : > { %1316 = vrot.lane.b32.xlu1 %v521_v37, %s2904_s26  ;;  %v1757_v62 = vsel %vm1745_vm6, %v1724_v27, %v4009_v12  ;;  %v587_v37 = vld [vmem:[#allocation2 + $0x18a] sm:$0xff] }
 0x208   : > { %1444 = vrot.lane.b32.xlu0 %v553_v14, %s2905_s27 }
 0x209   : > { %v4021_v47 = vpop.permute.xlu1 %1048  ;;  %v1411_v40 = vpop.permute.xlu0 %1410 }
 0x20a   : > { %v1822_v34 = vsel %vm1811_vm9, %v1789_v26, %v1411_v40 }
 0x20b   : > { %1062 = vrot.lane.b32.xlu1 %v552_v1, %s2902_s5 }
 0x20c   : > { %1064 = vrot.lane.b32.xlu0 %v553_v14, %s2902_s5  ;;  %v1700_v14 = vsel %vm1679_vm4, %v1667_v49, %v4608_v46  ;;  %v4619_v49 = vld [vmem:[#allocation70_spill] sm:$0xff] }
 0x20d   : > { %v1285_v45 = vpop.permute.xlu1 %1284  ;;  %v4035_v36 = vpop.permute.xlu0 %1176  ;;  %v1733_v17 = vsel %vm1712_vm5, %v1700_v14, %v4609_v20 }
 0x20e   : > { %v1790_v48 = vsel %vm1778_vm7, %v1757_v62, %v1285_v45  ;;  %v1766_v40 = vsel %vm1745_vm6, %v1733_v17, %v4017_v52  ;;  %v2790_v17 = vld [vmem:[#allocation2 + $0x108] sm:$0xff] }
 0x20f   : > { %1570 = vrot.lane.b32.xlu1 %v584_v9, %s2906_s28 }
 0x210   : > { %1572 = vrot.lane.b32.xlu0 %v585_v55, %s2906_s28 }
 0x211   : > { %v1557_v41 = vpop.permute.xlu1 %1556  ;;  %v1413_v19 = vpop.permute.xlu0 %1412 }
 0x212   : > { %v1864_v32 = vsel %vm1844_vm8, %v1831_v50, %v1557_v41  ;;  %v1823_v1 = vsel %vm1811_vm9, %v1790_v48, %v1413_v19  ;;  %v525_v50 = vld [vmem:[#allocation2 + $0x1a0] sm:$0xff]  ;;  %v4611_v19 = vld [vmem:[#allocation57_spill] sm:$0xff] }
 0x213   : > { %1190 = vrot.lane.b32.xlu1 %v584_v9, %s2903_s20  ;;  %2696 = vmatmul.mubr.msk.f32.gmra.mrb[2].mxu1 %vm1882_vm10, %v1864_v32  ;;  %v588_v32 = vld [vmem:[#allocation2 + $0x19a] sm:$0xff] }
 0x214   : > { %1318 = vrot.lane.b32.xlu0 %v522_v29, %s2904_s26  ;;  %v2787_v29 = vld [vmem:[#allocation2 + $0xf8] sm:$0xff] }
 0x215   : > { %v1303_v4 = vpop.permute.xlu1 %1302  ;;  %v1635_v3 = vsel %vm180_vm0, %v2787_v29, %v4610_v43 }
 0x216   : > { %v4055_v16 = vpop.permute.xlu0 %1158  ;;  %v1799_v9 = vsel %vm1778_vm7, %v1766_v40, %v1303_v4  ;;  %v1668_v13 = vsel %vm1646_vm3, %v1635_v3, %v4611_v19  ;;  %v4621_v40 = vld [vmem:[#allocation32_spill] sm:$0xff] }
 0x217   : > { %1192 = vrot.lane.b32.xlu1 %v585_v55, %s2903_s20  ;;  %v1701_v4 = vsel %vm1679_vm4, %v1668_v13, %v4612_v15 }
 0x218   : > { %1446 = vrot.lane.b32.xlu0 %v554_v0, %s2905_s27  ;;  %v1734_v53 = vsel %vm1712_vm5, %v1701_v4, %v4021_v47  ;;  %v4614_v47 = vld [vmem:[#allocation50_spill] sm:$0xff] }
 0x219   : > { %v1539_v2 = vpop.permute.xlu1 %1538 }
 0x21a   : > { %v1855_v59 = vsel %vm1844_vm8, %v1822_v34, %v1539_v2  ;;  %v1431_v54 = vpop.permute.xlu0 %1430 }
 0x21b   : > { %1320 = vrot.lane.b32.xlu1 %v523_v28, %s2904_s26  ;;  %2683 = vmatprep.mubr.msk.f32.mxu0 %vm1882_vm10, %v1855_v59  ;;  %v1832_v45 = vsel %vm1811_vm9, %v1799_v9, %v1431_v54  ;;  %v589_v28 = vld [vmem:[#allocation2 + $0x1a2] sm:$0xff]  ;;  %v1636_v9 = vsel %vm180_vm0, %v2790_v17, %v4621_v40 }
 0x21c   : > { %1448 = vrot.lane.b32.xlu0 %v555_v56, %s2905_s27  ;;  %v4615_v54 = vld [vmem:[#allocation67_spill] sm:$0xff] }
 0x21d   : > { %v1305_v61 = vpop.permute.xlu1 %1304 }
 0x21e   : > { %v4075_v30 = vpop.permute.xlu0 %1050 }
 0x21f   : > { %1066 = vrot.lane.b32.xlu1 %v554_v0, %s2902_s5  ;;  %v1767_v0 = vsel %vm1745_vm6, %v1734_v53, %v4035_v36  ;;  %v4624_v53 = vld [vmem:[#allocation37_spill] sm:$0xff] }
 0x220   : > { %1068 = vrot.lane.b32.xlu0 %v555_v56, %s2902_s5  ;;  %v1800_v26 = vsel %vm1778_vm7, %v1767_v0, %v1305_v61  ;;  %v2788_v56 = vld [vmem:[#allocation2 + $0x90] sm:$0xff]  ;;  %s2576_s5 = sshll.u32 %s4392_s29, 1 }
 0x221   : > { %v1541_v57 = vpop.permute.xlu1 %1540  ;;  %v1626_v31 = vsel %vm180_vm0, %v2788_v56, %v4613_v35  ;;  %s174_s7 = scalar_lea.vmem [#allocation5], %s2576_s5 }
 0x222   : > { %v1856_v12 = vsel %vm1844_vm8, %v1823_v1, %v1541_v57  ;;  %v1287_v51 = vpop.permute.xlu0 %1286  ;;  %v1659_v36 = vsel %vm1646_vm3, %v1626_v31, %v4614_v47  ;;  %v4618_v57 = vld [vmem:[#allocation53_spill] sm:$0xff]  ;;  %s2480_s8 = sshll.u32 %s174_s7, 4  ;;  %s4409_s8 = int_to_ptr.vmem [resolvable:$true] %s2480_s8 }
 0x223   : > { %1574 = vrot.lane.b32.xlu1 %v586_v60, %s2906_s28  ;;  %2684 = vmatmul.mubr.msk.f32.gmra.mrb[10].mxu0 %vm1882_vm10, %v1856_v12  ;;  %v1692_v25 = vsel %vm1679_vm4, %v1659_v36, %v4615_v54  ;;  %v1660_v23 = vsel %vm1646_vm3, %v1627_v8, %v4618_v57  ;;  %v2792_v54 = vld [vmem:[#allocation2 + $0xa8] sm:$0xff]  ;;  %s2802_s19 = scalar_lea.vmem %s4409_s8, 32 }
 0x224   : > { %1576 = vrot.lane.b32.xlu0 %v587_v37, %s2906_s28  ;;  %v1725_v38 = vsel %vm1712_vm5, %v1692_v25, %v4616_v7  ;;  %v4627_v25 = vld [vmem:[#allocation23_spill] sm:$0xff]  ;;  %p2803_p11 = scmp.ne.s32.totalorder %s4409_s8, %s2802_s19 }
 0x225   : > { %v1161_v18 = vpop.permute.xlu1 %1160  ;;  %v1758_v61 = vsel %vm1745_vm6, %v1725_v38, %v4055_v16  ;;  %v1693_v16 = vsel %vm1679_vm4, %v1660_v23, %v4619_v49  ;;  %v4628_v38 = vld [vmem:[#allocation52_spill] sm:$0xff]  ;;  %v4632_v8 = vld [vmem:[#allocation87_spill] sm:$0xff] }
 0x226   : > { %v1559_v58 = vpop.permute.xlu0 %1558  ;;  %v1791_v27 = vsel %vm1778_vm7, %v1758_v61, %v1287_v51  ;;  %v2793_v61 = vld [vmem:[#allocation2 + $0xb0] sm:$0xff]  ;;  %v4633_v57 = vld [vmem:[#allocation71_spill] sm:$0xff]  ;;  %p2804_p12 = pnand %p2803_p11, %p2967_p5 }
 0x227   : > { %1194 = vrot.lane.b32.xlu1 %v586_v60, %s2903_s20  ;;  %v1865_v55 = vsel %vm1844_vm8, %v1832_v45, %v1559_v58  ;;  %v4622_v58 = vld [vmem:[#allocation56_spill] sm:$0xff] }
 0x228   : > { %1322 = vrot.lane.b32.xlu0 %v524_v63, %s2904_s26  ;;  %2698 = vmatprep.mubr.msk.f32.mxu1 %vm1882_vm10, %v1865_v55  ;;  %v1669_v55 = vsel %vm1646_vm3, %v1636_v9, %v4622_v58  ;;  %p2805_p13 = pneg %p2804_p12 }
 0x229   : > { %v1433_v6 = vpop.permute.xlu1 %1432 }
 0x22a   : > { %v1179_v52 = vpop.permute.xlu0 %1178  ;;  %v1833_v34 = vsel %vm1811_vm9, %v1800_v26, %v1433_v6  ;;  %v4625_v26 = vld [vmem:[#allocation59_spill] sm:$0xff] }
 0x22b   : > { %1196 = vrot.lane.b32.xlu1 %v587_v37, %s2903_s20  ;;  %v4620_v37 = vld [vmem:[#allocation88_spill] sm:$0xff]  ;;  %s2907_s20 = smov [#allocation5]  }
 0x22c   : > { %1450 = vrot.lane.b32.xlu0 %v556_v42, %s2905_s27  ;;  %v1726_v46 = vsel %vm1712_vm5, %v1693_v16, %v4620_v37  ;;  %v4623_v42 = vld [vmem:[#allocation73_spill] sm:$0xff]  ;;  %s2806_s24 = sshll.u32 %s2907_s20, 4  ;;  %s2807_s24 = int_to_ptr.vmem [resolvable:$false] %s2806_s24 }
 0x22d   : > { %v4103_v41 = vpop.permute.xlu1 %1052  ;;  %v1759_v14 = vsel %vm1745_vm6, %v1726_v46, %v1161_v18  ;;  %s2808_s25 = scalar_lea.vmem %s2807_s24, 64  ;;  %p2809_p0 = scmp.lt.s32.totalorder %s4409_s8, %s2807_s24 }
 0x22e   : > { %v1415_v24 = vpop.permute.xlu0 %1414  ;;  %p2810_p1 = scmp.lt.s32.totalorder %s2808_s25, %s2802_s19 }
 0x22f   : > { %1324 = vrot.lane.b32.xlu1 %v525_v50, %s2904_s26  ;;  %v1824_v62 = vsel %vm1811_vm9, %v1791_v27, %v1415_v24  ;;  %v1702_v50 = vsel %vm1679_vm4, %v1669_v55, %v4623_v42  ;;  %v2794_v55 = vld [vmem:[#allocation2 + $0x120] sm:$0xff] }
 0x230   : > { %1578 = vrot.lane.b32.xlu0 %v588_v32, %s2906_s28  ;;  %v1735_v32 = vsel %vm1712_vm5, %v1702_v50, %v4075_v30  ;;  %p2811_p2 = por %p2810_p1, %p2809_p0 }
 0x231   : > { %v1289_v11 = vpop.permute.xlu1 %1288  ;;  %v1768_v29 = vsel %vm1745_vm6, %v1735_v32, %v1179_v52 }
 0x232   : > { %v1181_v21 = vpop.permute.xlu0 %1180  ;;  %v1792_v20 = vsel %vm1778_vm7, %v1759_v14, %v1289_v11  ;;  %v2791_v11 = vld [vmem:[#allocation2 + $0x110] sm:$0xff]  ;;  %p2812_p3 = pnand %p2811_p2, %p2805_p13 }
 0x233   : > { %1452 = vrot.lane.b32.xlu1 %v557_v39, %s2905_s27  ;;  %v1637_v0 = vsel %vm180_vm0, %v2791_v11, %v4624_v53 }
 0x234   : > { %v1670_v52 = vsel %vm1646_vm3, %v1637_v0, %v4625_v26  ;;  %v4640_v0 = vld [vmem:[#allocation78_spill] sm:$0xff] }
 0x235   : > { %v1561_v2 = vpop.permute.xlu1 %1560 }
 0x236   : > { %v1866_v59 = vsel %vm1844_vm8, %v1833_v34, %v1561_v2  ;;  %v1417_v5 = vpop.permute.xlu0 %1416 }
 0x237   : > { %1580 = vrot.lane.b32.xlu1 %v589_v28, %s2906_s28  ;;  %2699 = vmatmul.mubr.msk.f32.gmra.mrb[4].mxu1 %vm1882_vm10, %v1866_v59  ;;  %v1825_v63 = vsel %vm1811_vm9, %v1792_v20, %v1417_v5  ;;  %v4626_v28 = vld [vmem:[#allocation76_spill] sm:$0xff] }
 0x238   : > { %v1703_v34 = vsel %vm1679_vm4, %v1670_v52, %v4626_v28 }
 0x239   : > { %v1307_v44 = vpop.permute.xlu1 %1306  ;;  %v1736_v59 = vsel %vm1712_vm5, %v1703_v34, %v4103_v41 }
 0x23a   : > { %v1163_v22 = vpop.permute.xlu0 %1162  ;;  %v1801_v3 = vsel %vm1778_vm7, %v1768_v29, %v1307_v44  ;;  %v1769_v56 = vsel %vm1745_vm6, %v1736_v59, %v1181_v21  ;;  %v1628_v44 = vsel %vm180_vm0, %v2792_v54, %v4627_v25  ;;  %v4629_v21 = vld [vmem:[#allocation26_spill] sm:$0xff]  ;;  %v2795_v29 = vld [vmem:[#allocation2 + $0x128] sm:$0xff] }
 0x23b   : > { %v1661_v41 = vsel %vm1646_vm3, %v1628_v44, %v4628_v38  ;;  %v1629_v27 = vsel %vm180_vm0, %v2793_v61, %v4629_v21  ;;  %v2796_v25 = vld [vmem:[#allocation2 + $0x138] sm:$0xff] }
 0x23c   : > { %v1662_v10 = vsel %vm1646_vm3, %v1629_v27, %v4631_v33  ;;  %v4641_v44 = vld [vmem:[#allocation38_spill] sm:$0xff] }
 0x23d   : > { %v1543_v48 = vpop.permute.xlu1 %1542  ;;  %v1695_v23 = vsel %vm1679_vm4, %v1662_v10, %v4633_v57  ;;  %v2797_v27 = vld [vmem:[#allocation2 + $0x140] sm:$0xff] }
 0x23e   : > { %v1857_v60 = vsel %vm1844_vm8, %v1824_v62, %v1543_v48  ;;  %v1435_v1 = vpop.permute.xlu0 %1434  ;;  %v4630_v62 = vld [vmem:[#allocation69_spill] sm:$0xff] }
 0x23f   : > { %2686 = vmatprep.mubr.msk.f32.mxu0 %vm1882_vm10, %v1857_v60  ;;  %v1834_v24 = vsel %vm1811_vm9, %v1801_v3, %v1435_v1  ;;  %v1694_v48 = vsel %vm1679_vm4, %v1661_v41, %v4630_v62  ;;  %v4642_v41 = vld [vmem:[#allocation60_spill] sm:$0xff]  ;;  %v4643_v62 = vld [vmem:[#allocation42_spill] sm:$0xff] }
 0x240   : > { %v1727_v1 = vsel %vm1712_vm5, %v1694_v48, %v4632_v8  ;;  %v1641_v48 = vsel %vm180_vm0, %v2797_v27, %v4643_v62 }
 0x241   : > { %v1309_v12 = vpop.permute.xlu1 %1308  ;;  %v1760_v49 = vsel %vm1745_vm6, %v1727_v1, %v1163_v22 }
 0x242   : > { %v4146_v51 = vpop.permute.xlu0 %1054  ;;  %v1802_v31 = vsel %vm1778_vm7, %v1769_v56, %v1309_v12  ;;  %v4634_v12 = vld [vmem:[#allocation89_spill] sm:$0xff] }
 0x243   : > { %v1728_v37 = vsel %vm1712_vm5, %v1695_v23, %v4634_v12  ;;  %v4645_v23 = vld [vmem:[#allocation63_spill] sm:$0xff] }
 0x245   : > { %v1545_v45 = vpop.permute.xlu1 %1544 }
 0x246   : > { %v1858_v6 = vsel %vm1844_vm8, %v1825_v63, %v1545_v45  ;;  %v1291_v18 = vpop.permute.xlu0 %1290 }
 0x247   : > { %2687 = vmatmul.mubr.msk.f32.gmra.mrb[12].mxu0 %vm1882_vm10, %v1858_v6  ;;  %v1793_v46 = vsel %vm1778_vm7, %v1760_v49, %v1291_v18  ;;  %v4635_v6 = vld [vmem:[#allocation36_spill] sm:$0xff]  ;;  %v4636_v18 = vld [vmem:[#allocation58_spill] sm:$0xff]  ;;  %v1674_v49 = vsel %vm1646_vm3, %v1641_v48, %v4645_v23 }
 0x248   : > { %v1638_v42 = vsel %vm180_vm0, %v2794_v55, %v4635_v6 }
 0x249   : > { %v1165_v43 = vpop.permute.xlu1 %1164  ;;  %v1671_v32 = vsel %vm1646_vm3, %v1638_v42, %v4636_v18 }
 0x24a   : > { %v1563_v19 = vpop.permute.xlu0 %1562  ;;  %v1761_v14 = vsel %vm1745_vm6, %v1728_v37, %v1165_v43  ;;  %v4637_v43 = vld [vmem:[#allocation39_spill] sm:$0xff] }
 0x24b   : > { %v1867_v13 = vsel %vm1844_vm8, %v1834_v24, %v1563_v19  ;;  %v1639_v3 = vsel %vm180_vm0, %v2795_v29, %v4637_v43  ;;  %v4638_v24 = vld [vmem:[#allocation75_spill] sm:$0xff] }
 0x24c   : > { %2701 = vmatprep.mubr.msk.f32.mxu1 %vm1882_vm10, %v1867_v13  ;;  %v1704_v19 = vsel %vm1679_vm4, %v1671_v32, %v4638_v24 }
 0x24d   : > { %v1437_v39 = vpop.permute.xlu1 %1436  ;;  %v1737_v53 = vsel %vm1712_vm5, %v1704_v19, %v4146_v51 }
 0x24e   : > { %v1183_v15 = vpop.permute.xlu0 %1182  ;;  %v1835_v5 = vsel %vm1811_vm9, %v1802_v31, %v1437_v39  ;;  %v4639_v39 = vld [vmem:[#allocation61_spill] sm:$0xff] }
 0x24f   : > { %v1672_v11 = vsel %vm1646_vm3, %v1639_v3, %v4639_v39  ;;  %v1770_v26 = vsel %vm1745_vm6, %v1737_v53, %v1183_v15 }
 0x251   : > { %v1057_v4 = vpop.permute.xlu1 %1056 }
 0x252   : > { %v1419_v30 = vpop.permute.xlu0 %1418 }
 0x253   : > { %v1826_v20 = vsel %vm1811_vm9, %v1793_v46, %v1419_v30  ;;  %v1705_v30 = vsel %vm1679_vm4, %v1672_v11, %v4640_v0  ;;  %v4646_v46 = vld [vmem:[#allocation80_spill] sm:$0xff] }
 0x254   : > { %v1738_v28 = vsel %vm1712_vm5, %v1705_v30, %v1057_v4 }
 0x255   : > { %v1293_v2 = vpop.permute.xlu1 %1292 }
 0x256   : > { %v1185_v35 = vpop.permute.xlu0 %1184  ;;  %v1794_v40 = vsel %vm1778_vm7, %v1761_v14, %v1293_v2  ;;  %v1707_v14 = vsel %vm1679_vm4, %v1674_v49, %v4646_v46 }
 0x257   : > { %v1771_v2 = vsel %vm1745_vm6, %v1738_v28, %v1185_v35  ;;  %v4647_v28 = vld [vmem:[#allocation40_spill] sm:$0xff] }
 0x259   : > { %v1565_v47 = vpop.permute.xlu1 %1564 }
 0x25a   : > { %v1868_v36 = vsel %vm1844_vm8, %v1835_v5, %v1565_v47  ;;  %v1421_v7 = vpop.permute.xlu0 %1420 }
 0x25b   : > { %2702 = vmatmul.mubr.msk.f32.gmra.mrb[6].mxu1 %vm1882_vm10, %v1868_v36  ;;  %v1827_v63 = vsel %vm1811_vm9, %v1794_v40, %v1421_v7  ;;  %v1640_v7 = vsel %vm180_vm0, %v2796_v25, %v4641_v44 }
 0x25c   : > { %v1673_v61 = vsel %vm1646_vm3, %v1640_v7, %v4642_v41  ;;  %v4651_v7 = vld [vmem:[#allocation65_spill] sm:$0xff] }
 0x25d   : > { %v1311_v60 = vpop.permute.xlu1 %1310 }
 0x25e   : > { %v1313_v16 = vpop.permute.xlu0 %1312  ;;  %v1803_v34 = vsel %vm1778_vm7, %v1770_v26, %v1311_v60  ;;  %v4644_v60 = vld [vmem:[#allocation77_spill] sm:$0xff] }
 0x25f   : > { %v1804_v31 = vsel %vm1778_vm7, %v1771_v2, %v1313_v16  ;;  %v1706_v33 = vsel %vm1679_vm4, %v1673_v61, %v4644_v60 }
 0x261   : > { %v1547_v17 = vpop.permute.xlu1 %1546 }
 0x262   : > { %v1859_v9 = vsel %vm1844_vm8, %v1826_v20, %v1547_v17  ;;  %v1549_v45 = vpop.permute.xlu0 %1548 }
 0x263   : > { %2689 = vmatprep.mubr.msk.f32.mxu0 %vm1882_vm10, %v1859_v9  ;;  %v1860_v22 = vsel %vm1844_vm8, %v1827_v63, %v1549_v45 }
 0x264   : > { %2690 = vmatmul.mubr.msk.f32.gmra.mrb[14].mxu0 %vm1882_vm10, %v1860_v22 }
 0x265   : > { %v1439_v58 = vpop.permute.xlu1 %1438 }
 0x266   : > { %v1441_v50 = vpop.permute.xlu0 %1440  ;;  %v1836_v59 = vsel %vm1811_vm9, %v1803_v34, %v1439_v58 }
 0x267   : > { %v1837_v51 = vsel %vm1811_vm9, %v1804_v31, %v1441_v50 }
 0x269   : > { %v1059_v13 = vpop.permute.xlu1 %1058 }
 0x26a   : > { %v1061_v52 = vpop.permute.xlu0 %1060  ;;  %v1739_v16 = vsel %vm1712_vm5, %v1706_v33, %v1059_v13 }
 0x26b   : > { %v1740_v63 = vsel %vm1712_vm5, %v1707_v14, %v1061_v52  ;;  %v2798_v52 = vld [vmem:[#allocation2 + $0x150] sm:$0xff] }
 0x26c   : > { %v1642_v34 = vsel %vm180_vm0, %v2798_v52, %v4647_v28  ;;  %v2801_v52 = vld [vmem:[#allocation2 + $0x170] sm:$0xff]  ;;  %v4656_v28 = vld [vmem:[#allocation46_spill] sm:$0xff] }
 0x26d   : > { %v1567_v56 = vpop.permute.xlu1 %1566 }
 0x26e   : > { %v1869_v5 = vsel %vm1844_vm8, %v1836_v59, %v1567_v56  ;;  %v1569_v47 = vpop.permute.xlu0 %1568  ;;  %v4648_v56 = vld [vmem:[#allocation62_spill] sm:$0xff] }
 0x26f   : > { %2704 = vmatprep.mubr.msk.f32.mxu1 %vm1882_vm10, %v1869_v5  ;;  %v1870_v15 = vsel %vm1844_vm8, %v1837_v51, %v1569_v47  ;;  %v1675_v31 = vsel %vm1646_vm3, %v1642_v34, %v4648_v56  ;;  %v2799_v47 = vld [vmem:[#allocation2 + $0x158] sm:$0xff]  ;;  %v1645_v34 = vsel %vm180_vm0, %v2801_v52, %v4656_v28 }
 0x270   : > { %2705 = vmatmul.mubr.msk.f32.gmra.mrb[8].mxu1 %vm1882_vm10, %v1870_v15  ;;  %v4649_v15 = vld [vmem:[#allocation44_spill] sm:$0xff]  ;;  %v4657_v56 = vld [vmem:[#allocation66_spill] sm:$0xff] }
 0x271   : > { %v1187_v4 = vpop.permute.xlu1 %1186 }
 0x272   : > { %v1315_v36 = vpop.permute.xlu0 %1314  ;;  %v1772_v20 = vsel %vm1745_vm6, %v1739_v16, %v1187_v4  ;;  %v1643_v4 = vsel %vm180_vm0, %v2799_v47, %v4649_v15 }
 0x273   : > { %v1805_v6 = vsel %vm1778_vm7, %v1772_v20, %v1315_v36  ;;  %v4650_v36 = vld [vmem:[#allocation79_spill] sm:$0xff] }
 0x275   : > { %v1189_v54 = vpop.permute.xlu1 %1188 }
 0x276   : > { %v1443_v35 = vpop.permute.xlu0 %1442  ;;  %v1773_v22 = vsel %vm1745_vm6, %v1740_v63, %v1189_v54  ;;  %v1708_v54 = vsel %vm1679_vm4, %v1675_v31, %v4650_v36  ;;  %v1678_v31 = vsel %vm1646_vm3, %v1645_v34, %v4657_v56 }
 0x277   : > { %v1838_v50 = vsel %vm1811_vm9, %v1805_v6, %v1443_v35 }
 0x279   : > { %v1317_v38 = vpop.permute.xlu1 %1316 }
 0x27a   : > { %v2670_v21 = vpop.f32.mrb[0].mxu0  ;;  %v1445_v1 = vpop.permute.xlu0 %1444  ;;  %v1806_v42 = vsel %vm1778_vm7, %v1773_v22, %v1317_v38  ;;  %v1676_v38 = vsel %vm1646_vm3, %v1643_v4, %v4651_v7  ;;  %v4654_v22 = vld [vmem:[#allocation64_spill] sm:$0xff] }
 0x27b   : > { %v2209_v10 = vsel %vm1646_vm3, %v2670_v21, 0.0  ;;  %v2280_v8 = vmul.f32 %v2670_v21, %v2670_v21  ;;  %v2049_v57 = vpop.f32.mrb[1].mxu0  ;;  %v1839_v29 = vsel %vm1811_vm9, %v1806_v42, %v1445_v1 }
 0x27c   : > { %v2208_v12 = vsel %vm1646_vm3, %v2049_v57, 0.0  ;;  %v2279_v37 = vmul.f32 %v2049_v57, %v2049_v57  ;;  %2381 = vxpose.xlu0.b32.start [1/16] (narrow) %v2049_v57, 8 }
 0x27d   : > { %v2312_v17 = vsel %vm1646_vm3, %v2280_v8, 0.0  ;;  %v2210_v40 = vadd.f32 %v2209_v10, %v2208_v12  ;;  %v1063_v9 = vpop.permute.xlu1 %1062 }
 0x27e   : > { %v2311_v45 = vsel %vm1646_vm3, %v2279_v37, 0.0  ;;  %v1065_v55 = vpop.permute.xlu0 %1064  ;;  %v1741_v41 = vsel %vm1712_vm5, %v1708_v54, %v1063_v9 }
 0x27f   : > { %v2313_v58 = vadd.f32 %v2312_v17, %v2311_v45  ;;  %v2800_v17 = vld [vmem:[#allocation2 + $0x168] sm:$0xff] }
 0x280   : > { %2382 = vxpose.xlu0.b32.cont [2/16] (narrow) %v2670_v21, 8  ;;  %v4652_v21 = vld [vmem:[#allocation82_spill] sm:$0xff] }
 0x281   : > { %v1571_v18 = vpop.permute.xlu1 %1570  ;;  %v1709_v27 = vsel %vm1679_vm4, %v1676_v38, %v4652_v21 }
 0x282   : > { %v1871_v32 = vsel %vm1844_vm8, %v1838_v50, %v1571_v18  ;;  %v1573_v43 = vpop.permute.xlu0 %1572  ;;  %v1742_v33 = vsel %vm1712_vm5, %v1709_v27, %v1065_v55  ;;  %v4655_v50 = vld [vmem:[#allocation81_spill] sm:$0xff] }
 0x283   : > { %2707 = vmatprep.mubr.msk.f32.mxu1 %vm1882_vm10, %v1871_v32  ;;  %v1872_v3 = vsel %vm1844_vm8, %v1839_v29, %v1573_v43 }
 0x284   : > { %2708 = vmatmul.mubr.msk.f32.gmra.mrb[10].mxu1 %vm1882_vm10, %v1872_v3 }
 0x285   : > { %v1191_v24 = vpop.permute.xlu1 %1190 }
 0x286   : > { %v1319_v19 = vpop.permute.xlu0 %1318  ;;  %v1774_v62 = vsel %vm1745_vm6, %v1741_v41, %v1191_v24 }
 0x287   : > { %v1807_v1 = vsel %vm1778_vm7, %v1774_v62, %v1319_v19 }
 0x289   : > { %v1193_v13 = vpop.permute.xlu1 %1192 }
 0x28a   : > { %v2673_v39 = vpop.f32.mrb[2].mxu0  ;;  %v1447_v11 = vpop.permute.xlu0 %1446  ;;  %v1775_v10 = vsel %vm1745_vm6, %v1742_v33, %v1193_v13 }
 0x28b   : > { %v2059_v53 = vpop.f32.mrb[3].mxu0  ;;  %v2282_v0 = vmul.f32 %v2673_v39, %v2673_v39  ;;  %v2213_v5 = vsel %vm1646_vm3, %v2673_v39, 0.0  ;;  %v1840_v23 = vsel %vm1811_vm9, %v1807_v1, %v1447_v11 }
 0x28c   : > { %v2211_v30 = vsel %vm1646_vm3, %v2059_v53, 0.0  ;;  %v2281_v26 = vmul.f32 %v2059_v53, %v2059_v53  ;;  %2383 = vxpose.xlu0.b32.cont [3/16] (narrow) %v2059_v53, 8 }
 0x28d   : > { %v2212_v2 = vadd.f32 %v2211_v30, %v2210_v40  ;;  %v1321_v59 = vpop.permute.xlu1 %1320  ;;  %v2316_v61 = vsel %vm1646_vm3, %v2282_v0, 0.0  ;;  %v4653_v40 = vld [vmem:[#allocation43_spill] sm:$0xff] }
 0x28e   : > { %v2314_v51 = vsel %vm1646_vm3, %v2281_v26, 0.0  ;;  %v1449_v25 = vpop.permute.xlu0 %1448  ;;  %v1808_v57 = vsel %vm1778_vm7, %v1775_v10, %v1321_v59  ;;  %v1644_v9 = vsel %vm180_vm0, %v2800_v17, %v4653_v40 }
 0x28f   : > { %v2315_v35 = vadd.f32 %v2314_v51, %v2313_v58  ;;  %v2214_v44 = vadd.f32 %v2213_v5, %v2212_v2  ;;  %v1841_v12 = vsel %vm1811_vm9, %v1808_v57, %v1449_v25  ;;  %v1677_v58 = vsel %vm1646_vm3, %v1644_v9, %v4654_v22  ;;  %v4658_v51 = vld [vmem:[#allocation83_spill] sm:$0xff] }
 0x290   : > { %2384 = vxpose.xlu0.b32.cont [4/16] (narrow) %v2673_v39, 8  ;;  %v1710_v18 = vsel %vm1679_vm4, %v1677_v58, %v4655_v50  ;;  %v1711_v47 = vsel %vm1679_vm4, %v1678_v31, %v4658_v51 }
 0x291   : > { %v1067_v48 = vpop.permute.xlu1 %1066  ;;  %v2317_v60 = vadd.f32 %v2316_v61, %v2315_v35 }
 0x292   : > { %v1069_v8 = vpop.permute.xlu0 %1068  ;;  %v1743_v43 = vsel %vm1712_vm5, %v1710_v18, %v1067_v48 }
 0x293   : > { %v1744_v4 = vsel %vm1712_vm5, %v1711_v47, %v1069_v8 }
 0x295   : > { %v1575_v49 = vpop.permute.xlu1 %1574 }
 0x296   : > { %v1873_v16 = vsel %vm1844_vm8, %v1840_v23, %v1575_v49  ;;  %v1577_v37 = vpop.permute.xlu0 %1576 }
 0x297   : > { %2710 = vmatprep.mubr.msk.f32.mxu1 %vm1882_vm10, %v1873_v16  ;;  %v1874_v46 = vsel %vm1844_vm8, %v1841_v12, %v1577_v37 }
 0x298   : > { %2711 = vmatmul.mubr.msk.f32.gmra.mrb[12].mxu1 %vm1882_vm10, %v1874_v46 }
 0x299   : > { %v1195_v14 = vpop.permute.xlu1 %1194 }
 0x29a   : > { %v2676_v20 = vpop.f32.mrb[4].mxu0  ;;  %v1323_v63 = vpop.permute.xlu0 %1322  ;;  %v1776_v19 = vsel %vm1745_vm6, %v1743_v43, %v1195_v14 }
 0x29b   : > { %v2069_v45 = vpop.f32.mrb[5].mxu0  ;;  %v2284_v55 = vmul.f32 %v2676_v20, %v2676_v20  ;;  %v2217_v3 = vsel %vm1646_vm3, %v2676_v20, 0.0  ;;  %v1809_v26 = vsel %vm1778_vm7, %v1776_v19, %v1323_v63 }
 0x29c   : > { %v2215_v6 = vsel %vm1646_vm3, %v2069_v45, 0.0  ;;  %v2283_v42 = vmul.f32 %v2069_v45, %v2069_v45  ;;  %2385 = vxpose.xlu0.b32.cont [5/16] (narrow) %v2069_v45, 8 }
 0x29d   : > { %v2216_v32 = vadd.f32 %v2215_v6, %v2214_v44  ;;  %v1197_v29 = vpop.permute.xlu1 %1196  ;;  %v2320_v53 = vsel %vm1646_vm3, %v2284_v55, 0.0 }
 0x29e   : > { %v2318_v24 = vsel %vm1646_vm3, %v2283_v42, 0.0  ;;  %v1451_v39 = vpop.permute.xlu0 %1450  ;;  %v1777_v36 = vsel %vm1745_vm6, %v1744_v4, %v1197_v29 }
 0x29f   : > { %v2319_v13 = vadd.f32 %v2318_v24, %v2317_v60  ;;  %v2218_v11 = vadd.f32 %v2217_v3, %v2216_v32  ;;  %v1842_v2 = vsel %vm1811_vm9, %v1809_v26, %v1451_v39 }
 0x2a0   : > { %2386 = vxpose.xlu0.b32.cont [6/16] (narrow) %v2676_v20, 8 }
 0x2a1   : > { %v1325_v0 = vpop.permute.xlu1 %1324  ;;  %v2321_v30 = vadd.f32 %v2320_v53, %v2319_v13 }
 0x2a2   : > { %v1579_v59 = vpop.permute.xlu0 %1578  ;;  %v1810_v54 = vsel %vm1778_vm7, %v1777_v36, %v1325_v0 }
 0x2a3   : > { %v1875_v5 = vsel %vm1844_vm8, %v1842_v2, %v1579_v59 }
 0x2a4   : > { %2713 = vmatprep.mubr.msk.f32.mxu1 %vm1882_vm10, %v1875_v5 }
 0x2a5   : > { %v1453_v15 = vpop.permute.xlu1 %1452 }
 0x2a6   : > { %v1843_v35 = vsel %vm1811_vm9, %v1810_v54, %v1453_v15 }
 0x2a9   : > { %v1581_v25 = vpop.permute.xlu1 %1580 }
 0x2aa   : > { %v1876_v44 = vsel %vm1844_vm8, %v1843_v35, %v1581_v25 }
 0x2ab   : > { %2714 = vmatmul.mubr.msk.f32.gmra.mrb[14].mxu1 %vm1882_vm10, %v1876_v44 }
 0x2ae   : > { %v2679_v7 = vpop.f32.mrb[6].mxu0 }
 0x2af   : > { %v2079_v38 = vpop.f32.mrb[7].mxu0  ;;  %v2286_v41 = vmul.f32 %v2679_v7, %v2679_v7  ;;  %v2221_v62 = vsel %vm1646_vm3, %v2679_v7, 0.0 }
 0x2b0   : > { %v2219_v61 = vsel %vm1646_vm3, %v2079_v38, 0.0  ;;  %v2285_v21 = vmul.f32 %v2079_v38, %v2079_v38  ;;  %2387 = vxpose.xlu0.b32.cont [7/16] (narrow) %v2079_v38, 8 }
 0x2b1   : > { %v2220_v27 = vadd.f32 %v2219_v61, %v2218_v11  ;;  %v2324_v10 = vsel %vm1646_vm3, %v2286_v41, 0.0 }
 0x2b2   : > { %v2322_v48 = vsel %vm1646_vm3, %v2285_v21, 0.0 }
 0x2b3   : > { %v2323_v60 = vadd.f32 %v2322_v48, %v2321_v30  ;;  %v2222_v33 = vadd.f32 %v2221_v62, %v2220_v27 }
 0x2b4   : > { %2388 = vxpose.xlu0.b32.cont [8/16] (narrow) %v2679_v7, 8 }
 0x2b5   : > { %v2325_v8 = vadd.f32 %v2324_v10, %v2323_v60 }
 0x2be   : > { %v4317_v1 = vpop.f32.mrb[0].mxu1 }
 0x2bf   : > { %v4319_v57 = vpop.f32.mrb[1].mxu1  ;;  %v2296_v61 = vmul.f32 %v4317_v1, %v4317_v1  ;;  %v2241_v60 = vsel %vm1646_vm3, %v4317_v1, 0.0 }
 0x2c0   : > { %2413 = vxpose.xlu1.b32.start [1/16] (narrow) %v4319_v57, 8  ;;  %v2295_v25 = vmul.f32 %v4319_v57, %v4319_v57  ;;  %v2239_v21 = vsel %vm1646_vm3, %v4319_v57, 0.0 }
 0x2c4   : > { %2414 = vxpose.xlu1.b32.cont [2/16] (narrow) %v4317_v1, 8 }
 0x2ce   : > { %v2682_v23 = vpop.f32.mrb[8].mxu0 }
 0x2cf   : > { %v2089_v49 = vpop.f32.mrb[9].mxu0  ;;  %v2288_v16 = vmul.f32 %v2682_v23, %v2682_v23  ;;  %v2225_v14 = vsel %vm1646_vm3, %v2682_v23, 0.0 }
 0x2d0   : > { %v2223_v12 = vsel %vm1646_vm3, %v2089_v49, 0.0  ;;  %v2287_v37 = vmul.f32 %v2089_v49, %v2089_v49  ;;  %2389 = vxpose.xlu0.b32.cont [9/16] (narrow) %v2089_v49, 8  ;;  %v2344_v49 = vsel %vm1646_vm3, %v2296_v61, 0.0 }
 0x2d1   : > { %v2224_v46 = vadd.f32 %v2223_v12, %v2222_v33  ;;  %v2328_v9 = vsel %vm1646_vm3, %v2288_v16, 0.0  ;;  %v2342_v33 = vsel %vm1646_vm3, %v2295_v25, 0.0 }
 0x2d2   : > { %v2326_v20 = vsel %vm1646_vm3, %v2287_v37, 0.0 }
 0x2d3   : > { %v2327_v17 = vadd.f32 %v2326_v20, %v2325_v8  ;;  %v2226_v40 = vadd.f32 %v2225_v14, %v2224_v46 }
 0x2d4   : > { %2390 = vxpose.xlu0.b32.cont [10/16] (narrow) %v2682_v23, 8 }
 0x2d5   : > { %v2329_v63 = vadd.f32 %v2328_v9, %v2327_v17 }
 0x2e6   : > { %v4327_v45 = vpop.f32.mrb[2].mxu1 }
 0x2e7   : > { %v4329_v22 = vpop.f32.mrb[3].mxu1  ;;  %v2298_v57 = vmul.f32 %v4327_v45, %v4327_v45  ;;  %v2245_v1 = vsel %vm1646_vm3, %v4327_v45, 0.0 }
 0x2e8   : > { %2415 = vxpose.xlu1.b32.cont [3/16] (narrow) %v4329_v22, 8  ;;  %v2297_v10 = vmul.f32 %v4329_v22, %v4329_v22  ;;  %v2243_v16 = vsel %vm1646_vm3, %v4329_v22, 0.0 }
 0x2ea   : > { %v2346_v46 = vsel %vm1646_vm3, %v2297_v10, 0.0 }
 0x2ec   : > { %2416 = vxpose.xlu1.b32.cont [4/16] (narrow) %v4327_v45, 8 }
 0x2f6   : > { %v2685_v58 = vpop.f32.mrb[10].mxu0 }
 0x2f7   : > { %v2099_v55 = vpop.f32.mrb[11].mxu0  ;;  %v2290_v6 = vmul.f32 %v2685_v58, %v2685_v58  ;;  %v2229_v32 = vsel %vm1646_vm3, %v2685_v58, 0.0 }
 0x2f8   : > { %v2227_v42 = vsel %vm1646_vm3, %v2099_v55, 0.0  ;;  %v2289_v50 = vmul.f32 %v2099_v55, %v2099_v55  ;;  %2391 = vxpose.xlu0.b32.cont [11/16] (narrow) %v2099_v55, 8 }
 0x2f9   : > { %v2228_v18 = vadd.f32 %v2227_v42, %v2226_v40  ;;  %v2332_v24 = vsel %vm1646_vm3, %v2290_v6, 0.0 }
 0x2fa   : > { %v2330_v29 = vsel %vm1646_vm3, %v2289_v50, 0.0 }
 0x2fb   : > { %v2331_v43 = vadd.f32 %v2330_v29, %v2329_v63  ;;  %v2230_v3 = vadd.f32 %v2229_v32, %v2228_v18  ;;  %v2348_v63 = vsel %vm1646_vm3, %v2298_v57, 0.0 }
 0x2fc   : > { %2392 = vxpose.xlu0.b32.cont [12/16] (narrow) %v2685_v58, 8 }
 0x2fd   : > { %v2333_v19 = vadd.f32 %v2332_v24, %v2331_v43 }
 0x30a   : > { %v4337_v13 = vpop.f32.mrb[4].mxu1 }
 0x30b   : > { %v2149_v39 = vpop.f32.mrb[5].mxu1  ;;  %v2300_v58 = vmul.f32 %v4337_v13, %v4337_v13  ;;  %v2249_v45 = vsel %vm1646_vm3, %v4337_v13, 0.0 }
 0x30c   : > { %2417 = vxpose.xlu1.b32.cont [5/16] (narrow) %v2149_v39, 8  ;;  %v2299_v14 = vmul.f32 %v2149_v39, %v2149_v39  ;;  %v2247_v55 = vsel %vm1646_vm3, %v2149_v39, 0.0 }
 0x30d   : > { %v2352_v29 = vsel %vm1646_vm3, %v2300_v58, 0.0 }
 0x30e   : > { %v2350_v42 = vsel %vm1646_vm3, %v2299_v14, 0.0 }
 0x310   : > { %2418 = vxpose.xlu1.b32.cont [6/16] (narrow) %v4337_v13, 8 }
 0x31a   : > { %v2688_v11 = vpop.f32.mrb[12].mxu0 }
 0x31b   : > { %v2109_v53 = vpop.f32.mrb[13].mxu0  ;;  %v2292_v0 = vmul.f32 %v2688_v11, %v2688_v11  ;;  %v2233_v28 = vsel %vm1646_vm3, %v2688_v11, 0.0 }
 0x31c   : > { %v2231_v30 = vsel %vm1646_vm3, %v2109_v53, 0.0  ;;  %v2291_v26 = vmul.f32 %v2109_v53, %v2109_v53  ;;  %2393 = vxpose.xlu0.b32.cont [13/16] (narrow) %v2109_v53, 8 }
 0x31d   : > { %v2232_v52 = vadd.f32 %v2231_v30, %v2230_v3  ;;  %v2336_v56 = vsel %vm1646_vm3, %v2292_v0, 0.0 }
 0x31e   : > { %v2334_v34 = vsel %vm1646_vm3, %v2291_v26, 0.0 }
 0x31f   : > { %v2335_v2 = vadd.f32 %v2334_v34, %v2333_v19  ;;  %v2234_v59 = vadd.f32 %v2233_v28, %v2232_v52 }
 0x320   : > { %2394 = vxpose.xlu0.b32.cont [14/16] (narrow) %v2688_v11, 8 }
 0x321   : > { %v2337_v31 = vadd.f32 %v2336_v56, %v2335_v2 }
 0x32e   : > { %v2703_v5 = vpop.f32.mrb[6].mxu1 }
 0x32f   : > { %v2159_v51 = vpop.f32.mrb[7].mxu1  ;;  %v2302_v43 = vmul.f32 %v2703_v5, %v2703_v5  ;;  %v2253_v39 = vsel %vm1646_vm3, %v2703_v5, 0.0 }
 0x330   : > { %2419 = vxpose.xlu1.b32.cont [7/16] (narrow) %v2159_v51, 8  ;;  %v2301_v50 = vmul.f32 %v2159_v51, %v2159_v51  ;;  %v2251_v3 = vsel %vm1646_vm3, %v2159_v51, 0.0 }
 0x331   : > { %v2356_v30 = vsel %vm1646_vm3, %v2302_v43, 0.0 }
 0x332   : > { %v2354_v11 = vsel %vm1646_vm3, %v2301_v50, 0.0 }
 0x334   : > { %2420 = vxpose.xlu1.b32.cont [8/16] (narrow) %v2703_v5, 8 }
 0x337   : > { %v2691_v47 = vpop.f32.mrb[14].mxu0 }
 0x338   : > { %v2119_v15 = vpop.f32.mrb[15].mxu0  ;;  %v2294_v4 = vmul.f32 %v2691_v47, %v2691_v47  ;;  %v2237_v44 = vsel %vm1646_vm3, %v2691_v47, 0.0 }
 0x339   : > { %v2235_v36 = vsel %vm1646_vm3, %v2119_v15, 0.0  ;;  %v2293_v54 = vmul.f32 %v2119_v15, %v2119_v15  ;;  %2395 = vxpose.xlu0.b32.cont [15/16] (narrow) %v2119_v15, 8 }
 0x33a   : > { %v2236_v35 = vadd.f32 %v2235_v36, %v2234_v59  ;;  %v2340_v27 = vsel %vm1646_vm3, %v2294_v4, 0.0 }
 0x33b   : > { %v2338_v7 = vsel %vm1646_vm3, %v2293_v54, 0.0 }
 0x33c   : > { %v2238_v38 = vadd.f32 %v2237_v44, %v2236_v35  ;;  %v2339_v41 = vadd.f32 %v2338_v7, %v2337_v31 }
 0x33d   : > { %2396 = vxpose.xlu0.b32.end [16/16] (narrow) %v2691_v47, 8 }
 0x33e   : > { %v2240_v62 = vadd.f32 %v2239_v21, %v2238_v38  ;;  %v2341_v48 = vadd.f32 %v2340_v27, %v2339_v41 }
 0x340   : > { %v2242_v8 = vadd.f32 %v2241_v60, %v2240_v62  ;;  %v2343_v23 = vadd.f32 %v2342_v33, %v2341_v48 }
 0x342   : > { %v2244_v12 = vadd.f32 %v2243_v16, %v2242_v8  ;;  %v2345_v37 = vadd.f32 %v2344_v49, %v2343_v23 }
 0x343   : > { %v2706_v20 = vpop.f32.mrb[8].mxu1 }
 0x344   : > { %v2246_v17 = vadd.f32 %v2245_v1, %v2244_v12  ;;  %v2347_v40 = vadd.f32 %v2346_v46, %v2345_v37  ;;  %v2169_v9 = vpop.f32.mrb[9].mxu1  ;;  %v2304_v26 = vmul.f32 %v2706_v20, %v2706_v20  ;;  %v2257_v2 = vsel %vm1646_vm3, %v2706_v20, 0.0 }
 0x345   : > { %2421 = vxpose.xlu1.b32.cont [9/16] (narrow) %v2169_v9, 8  ;;  %v2303_v53 = vmul.f32 %v2169_v9, %v2169_v9  ;;  %v2255_v52 = vsel %vm1646_vm3, %v2169_v9, 0.0 }
 0x346   : > { %v2349_v22 = vadd.f32 %v2348_v63, %v2347_v40  ;;  %v2248_v6 = vadd.f32 %v2247_v55, %v2246_v17  ;;  %v2360_v5 = vsel %vm1646_vm3, %v2304_v26, 0.0 }
 0x347   : > { %v2358_v59 = vsel %vm1646_vm3, %v2303_v53, 0.0 }
 0x348   : > { %v2250_v18 = vadd.f32 %v2249_v45, %v2248_v6  ;;  %v2351_v32 = vadd.f32 %v2350_v42, %v2349_v22 }
 0x349   : > { %2422 = vxpose.xlu1.b32.cont [10/16] (narrow) %v2706_v20, 8 }
 0x34a   : > { %v2252_v24 = vadd.f32 %v2251_v3, %v2250_v18  ;;  %v2353_v19 = vadd.f32 %v2352_v29, %v2351_v32 }
 0x34c   : > { %v2254_v0 = vadd.f32 %v2253_v39, %v2252_v24  ;;  %v2355_v13 = vadd.f32 %v2354_v11, %v2353_v19 }
 0x34e   : > { %v2256_v28 = vadd.f32 %v2255_v52, %v2254_v0  ;;  %v2357_v34 = vadd.f32 %v2356_v30, %v2355_v13 }
 0x350   : > { %v2359_v56 = vadd.f32 %v2358_v59, %v2357_v34  ;;  %v2258_v31 = vadd.f32 %v2257_v2, %v2256_v28 }
 0x352   : > { %v2361_v51 = vadd.f32 %v2360_v5, %v2359_v56 }
 0x357   : > { %v2709_v47 = vpop.f32.mrb[10].mxu1 }
 0x358   : > { %v2179_v15 = vpop.f32.mrb[11].mxu1  ;;  %v2306_v4 = vmul.f32 %v2709_v47, %v2709_v47  ;;  %v2261_v25 = vsel %vm1646_vm3, %v2709_v47, 0.0 }
 0x359   : > { %v2259_v36 = vsel %vm1646_vm3, %v2179_v15, 0.0  ;;  %v2305_v54 = vmul.f32 %v2179_v15, %v2179_v15  ;;  %2423 = vxpose.xlu1.b32.cont [11/16] (narrow) %v2179_v15, 8 }
 0x35a   : > { %v2260_v35 = vadd.f32 %v2259_v36, %v2258_v31  ;;  %v2364_v41 = vsel %vm1646_vm3, %v2306_v4, 0.0 }
 0x35b   : > { %v2362_v44 = vsel %vm1646_vm3, %v2305_v54, 0.0 }
 0x35c   : > { %v2363_v7 = vadd.f32 %v2362_v44, %v2361_v51  ;;  %v2262_v38 = vadd.f32 %v2261_v25, %v2260_v35 }
 0x35d   : > { %2424 = vxpose.xlu1.b32.cont [12/16] (narrow) %v2709_v47, 8 }
 0x35e   : > { %v2365_v61 = vadd.f32 %v2364_v41, %v2363_v7 }
 0x36b   : > { %v2712_v21 = vpop.f32.mrb[12].mxu1 }
 0x36c   : > { %v2189_v27 = vpop.f32.mrb[13].mxu1  ;;  %v2308_v62 = vmul.f32 %v2712_v21, %v2712_v21  ;;  %v2265_v10 = vsel %vm1646_vm3, %v2712_v21, 0.0 }
 0x36d   : > { %v2263_v48 = vsel %vm1646_vm3, %v2189_v27, 0.0  ;;  %v2307_v60 = vmul.f32 %v2189_v27, %v2189_v27  ;;  %2425 = vxpose.xlu1.b32.cont [13/16] (narrow) %v2189_v27, 8 }
 0x36e   : > { %v2264_v33 = vadd.f32 %v2263_v48, %v2262_v38  ;;  %v2368_v57 = vsel %vm1646_vm3, %v2308_v62, 0.0 }
 0x36f   : > { %v2366_v8 = vsel %vm1646_vm3, %v2307_v60, 0.0 }
 0x370   : > { %v2367_v23 = vadd.f32 %v2366_v8, %v2365_v61  ;;  %v2266_v49 = vadd.f32 %v2265_v10, %v2264_v33 }
 0x371   : > { %2426 = vxpose.xlu1.b32.cont [14/16] (narrow) %v2712_v21, 8 }
 0x372   : > { %v2369_v16 = vadd.f32 %v2368_v57, %v2367_v23 }
 0x37e   : > { %v2715_v12 = vpop.f32.mrb[14].mxu1 }
 0x37f   : > { %v2199_v37 = vpop.f32.mrb[15].mxu1  ;;  %v2310_v1 = vmul.f32 %v2715_v12, %v2715_v12  ;;  %v2269_v17 = vsel %vm1646_vm3, %v2715_v12, 0.0 }
 0x380   : > { %v2267_v46 = vsel %vm1646_vm3, %v2199_v37, 0.0  ;;  %v2309_v14 = vmul.f32 %v2199_v37, %v2199_v37  ;;  %2427 = vxpose.xlu1.b32.cont [15/16] (narrow) %v2199_v37, 8 }
 0x381   : > { %v2268_v20 = vadd.f32 %v2267_v46, %v2266_v49  ;;  %v2397_v9 = vpop.trf.xlu0  ;;  %v2372_v55 = vsel %vm1646_vm3, %v2310_v1, 0.0 }
 0x382   : > { %v2370_v40 = vsel %vm1646_vm3, %v2309_v14, 0.0  ;;  %2445 = vst [vmem:[%s4398_s4] sm:$0xff] %v2397_v9 }
 0x383   : > { %v2270_v63 = vadd.f32 %v2269_v17, %v2268_v20  ;;  %v2371_v58 = vadd.f32 %v2370_v40, %v2369_v16 }
 0x384   : > { %2428 = vxpose.xlu1.b32.end [16/16] (narrow) %v2715_v12, 8 }
 0x385   : > { %v2271_v22 = vrot.slane %v2270_v63, 4  ;;  %v2373_v6 = vadd.f32 %v2372_v55, %v2371_v58 }
 0x387   : > { %v2272_v45 = vadd.f32 %v2271_v22, %v2270_v63  ;;  %v2374_v42 = vrot.slane %v2373_v6, 4 }
 0x389   : > { %v2273_v50 = vrot.slane %v2272_v45, 2  ;;  %v2375_v18 = vadd.f32 %v2374_v42, %v2373_v6 }
 0x38b   : > { %v2274_v32 = vadd.f32 %v2273_v50, %v2272_v45  ;;  %v2376_v29 = vrot.slane %v2375_v18, 2 }
 0x38d   : > { %v2275_v43 = vrot.slane %v2274_v32, 1  ;;  %v2377_v3 = vadd.f32 %v2376_v29, %v2375_v18 }
 0x38f   : > { %v2276_v24 = vadd.f32 %v2275_v43, %v2274_v32  ;;  %v2378_v19 = vrot.slane %v2377_v3, 1 }
 0x391   : > { %2278 = vst.msk [vmem:[%s174_s7] sm:$0x1] %vm2277_vm11, %v2276_v24  ;;  %v2379_v39 = vadd.f32 %v2378_v19, %v2377_v3 }
 0x393   : > { %2380 = vst.msk [vmem:[%s174_s7 + $0x1] sm:$0x1] %vm2277_vm11, %v2379_v39 }
 0x394   : > { %2815 = shalt.err (!%p2812_p3)
}
 0x395   : > { %s2816_s26 = scalar_lea.hbm %s4407_s11, 32  ;;  %s2820_s30 = scalar_lea.hbm %s4485_s3, 64 }
 0x396   : > { %p2817_p4 = scmp.ne.s32.totalorder %s4407_s11, %s2816_s26  ;;  %p2821_p9 = scmp.lt.u32.totalorder %s4407_s11, %s4485_s3 }
 0x397   : > { %p2822_p10 = scmp.lt.u32.totalorder %s2820_s30, %s2816_s26  ;;  %p2824_p12 = scmp.lt.u32.totalorder %s2816_s26, %s4407_s11 }
 0x398   : > { %p2818_p7 = pnand %p2817_p4, %p2967_p5 }
 0x399   : > { %p2823_p11 = por %p2822_p10, %p2821_p9 }
 0x39a   : > { %p2819_p8 = pneg %p2818_p7 }
 0x39b   : > { %p2825_p13 = por %p2824_p12, %p2823_p11 }
 0x39d   : > { %p2826_p0 = pnand %p2825_p13, %p2819_p8 }
 0x39f   : > { %2829 = shalt.err (!%p2826_p0)
}
 0x3a0   : > { %2731 = dma.vmem_to_hbm [thread:$0]  (%p2967_p5), %s4409_s8, 32, %s4407_s11, %s2453_s17  }
 0x3a1   : > { %s2467_s7 = sshll.u32 %s4398_s4, 4  ;;  %s2620_s9 = sshll.u32 %s2950_s16, 8  ;;  %s4435_s7 = int_to_ptr.vmem [resolvable:$true] %s2467_s7 }
 0x3a2   : > { %s4440_s20 = scalar_lea.hbm %s4484_s2, %s2620_s9  ;;  %s2448_s24 = scalar_lea.sflag [#allocation4], %s4392_s29 }
 0x3a3   : > { %s2830_s25 = scalar_lea.vmem %s4435_s7, 256  ;;  %s2908_s8 = smov [#allocation3]  }
 0x3a4   : > { %p2831_p1 = scmp.ne.s32.totalorder %s4435_s7, %s2830_s25  ;;  %s2834_s16 = sshll.u32 %s2908_s8, 4  ;;  %s2835_s16 = int_to_ptr.vmem [resolvable:$false] %s2834_s16 }
 0x3a5   : > { %s2836_s11 = scalar_lea.vmem %s2835_s16, 512  ;;  %p2837_p4 = scmp.lt.s32.totalorder %s4435_s7, %s2835_s16 }
 0x3a6   : > { %p2832_p2 = pnand %p2831_p1, %p2967_p5  ;;  %p2838_p7 = scmp.lt.s32.totalorder %s2836_s11, %s2830_s25 }
 0x3a8   : > { %p2833_p3 = pneg %p2832_p2  ;;  %p2839_p8 = por %p2838_p7, %p2837_p4 }
 0x3aa   : > { %p2840_p9 = pnand %p2839_p8, %p2833_p3 }
 0x3c8   : > { %v2429_v11 = vpop.trf.xlu1 }
 0x3c9   : > { %2446 = vst [vmem:[%s4398_s4 + $0x8] sm:$0xff] %v2429_v11 }
 0x3ca   : > { %2843 = shalt.err (!%p2840_p9)
}
 0x3cb   : > { %s2844_s29 = scalar_lea.hbm %s4440_s20, 256  ;;  %s2848_s26 = scalar_lea.hbm %s4484_s2, 512 }
 0x3cc   : > { %p2845_p10 = scmp.ne.s32.totalorder %s4440_s20, %s2844_s29  ;;  %p2849_p13 = scmp.lt.u32.totalorder %s4440_s20, %s4484_s2 }
 0x3cd   : > { %p2850_p0 = scmp.lt.u32.totalorder %s2848_s26, %s2844_s29  ;;  %p2852_p2 = scmp.lt.u32.totalorder %s2844_s29, %s4440_s20 }
 0x3ce   : > { %p2846_p11 = pnand %p2845_p10, %p2967_p5 }
 0x3cf   : > { %p2851_p1 = por %p2850_p0, %p2849_p13 }
 0x3d0   : > { %p2847_p12 = pneg %p2846_p11 }
 0x3d1   : > { %p2853_p3 = por %p2852_p2, %p2851_p1 }
 0x3d3   : > { %p2854_p4 = pnand %p2853_p3, %p2847_p12 }
 0x3d5   : > { %2857 = shalt.err (!%p2854_p4)
}
 0x3d6   : > { %2730 = dma.vmem_to_hbm [thread:$0]  (%p2967_p5), %s4435_s7, 256, %s4440_s20, %s2448_s24  }
 0x3d7 PF: > { %p2741_p7 = scmp.ge.s32.totalorder %s2896_s15, 2  ;;  %s2492_s30 = sand.u32 1, %s2884_s12  }
 0x3d8   : > { %s2493_s5 = scalar_lea.sflag [#allocation4], %s2492_s30 }
 0x3d9   : > { %p2735_p8 = pnand %p2741_p7, %p2971_p6 }
 0x3db   : > { %2875 = dma.done.wait (!%p2735_p8), %s2493_s5, 256  }
 0x3dc   : > { %2877 = vsyncadd (!%p2735_p8), %s2493_s5, 4294967040  ;;  %s2502_s6 = scalar_lea.sflag [#allocation6], %s2492_s30 }
 0x3dd   : > { %2879 = dma.done.wait (!%p2735_p8), %s2502_s6, 32  }
 0x3de   : > { %2881 = vsyncadd (!%p2735_p8), %s2502_s6, 4294967264  ;;  %p17_p5 = scmp.ge.s32.totalorder %s2954_s18, 4   ;;  %s4659_s12 = smov %s2888_s13 }
 0x3df   : > { %s4660_s13 = smov %s2892_s14  ;;  %s4661_s14 = smov %s2965_s21 }
 0x3e0   : > { %s4662_s15 = smov %s2954_s18  ;;  %19 = sbr.rel (!%p17_p5) target bundleno = 5 (0x5), region = 82 }
 0x3e7   :  { %2507 = vsyncpa [#allocation4], 1 }
 0x3e8   :  { %2509 = vsyncpa [#allocation4 + $0x1], 1 }
 0x3e9   :  { %2510 = vsyncpa [#allocation6], 1 }
 0x3ea   :  { %2512 = vsyncpa [#allocation6 + $0x1], 1 }

</bundles_post_ra>
